<compile_context>
chip_gen: v5e
topology: v5e:2x2
jax: 0.10.0
libtpu: 0.0.40
codegen_flags: <defaults>
</compile_context>

<pallas_src>
import jax
import jax.numpy as jnp
from jax.experimental import pallas as pl
from jax.experimental.pallas import tpu as pltpu

N_NODES = 8                      # nodes per face graph
IN_DIM = 2                       # raw node feature dim
HID = 32                         # hidden width
EPS = 1e-5                       # BatchNorm eps
GRAPHS_PER_TILE = 256            # graphs per grid step (lane axis, 2x128)
NPACK = IN_DIM + 3               # packed param columns: w1_f0 | w1_f1 | gamma | beta | wfold


def gcnface_kernel(x_ref, adj_ref, pm_ref, scal_ref, out_ref):
    """One grid step = GRAPHS_PER_TILE face graphs, graphs on the lane axis.

    x_ref:   (1, IN_DIM, N_NODES, G)   raw node features, x_ref[0,f,n,g]
    adj_ref: (1, N_NODES, N_NODES, G)  adj_ref[0,j,i,g] = adjn[g,i,j]
    pm_ref:  (HID, NPACK)              packed params (VMEM resident)
    scal_ref:(3,) SMEM                 [prelu_slope, c2, c_out]
    out_ref: (1, N_NODES, G)           per-node scores
    """
    w1c0 = pm_ref[:, 0:1]          # (HID,1) Linear(2,32) weights for feature 0
    w1c1 = pm_ref[:, 1:2]          # (HID,1) ... for feature 1
    gamma = pm_ref[:, 2:3]         # (HID,1) BatchNorm weight
    beta = pm_ref[:, 3:4]          # (HID,1) BatchNorm bias
    wfold = pm_ref[:, 4:5]         # (HID,1) = w2 @ wg @ wf (folded tail)
    slope = scal_ref[0]            # PReLU slope
    c2 = scal_ref[1]               # b2 @ wg @ wf (propagated through adjn)
    c_out = scal_ref[2]            # bg @ wf + bf (added after propagation)

    inv_n = 1.0 / N_NODES

    # Raw per-node features as (1, G) lane rows.
    x0 = [x_ref[0, 0, n:n + 1, :] for n in range(N_NODES)]
    x1 = [x_ref[0, 1, n:n + 1, :] for n in range(N_NODES)]

    # Per-graph node mean of the raw features.  Training-mode BatchNorm
    # subtracts the per-graph mean of h = x @ w1 + b1, so b1 cancels exactly
    # and the centered hidden activation is (x - x_mean) @ w1.
    xm0 = x0[0]
    xm1 = x1[0]
    for n in range(1, N_NODES):
        xm0 = xm0 + x0[n]
        xm1 = xm1 + x1[n]
    xm0 = xm0 * inv_n
    xm1 = xm1 * inv_n
    c0 = [x0[n] - xm0 for n in range(N_NODES)]
    c1 = [x1[n] - xm1 for n in range(N_NODES)]

    # Per-channel (biased) batch variance over the 8 nodes — pure VPU adds,
    # no MXU / averaging matrix needed.
    var = None
    for n in range(N_NODES):
        ctr = w1c0 * c0[n] + w1c1 * c1[n]          # (HID, G) = h_n - mean(h)
        sq = ctr * ctr
        var = sq if var is None else var + sq
    var = var * inv_n
    scale = jax.lax.rsqrt(var + EPS) * gamma       # (HID, G), rsqrt on EUP

    # BN affine + PReLU + folded Linear(32,32) -> GCN weight -> Linear(32,1).
    # ctr is recomputed (2 mul + 1 add) to keep vreg liveness low.
    pre = []
    for n in range(N_NODES):
        ctr = w1c0 * c0[n] + w1c1 * c1[n]
        a = ctr * scale + beta                     # BatchNorm1d output
        a = jnp.where(a >= 0.0, a, slope * a)      # PReLU; Dropout(p=0) = id
        pre.append(jnp.sum(a * wfold, axis=0, keepdims=True) + c2)   # (1, G)

    # Symmetric-normalized propagation:
    #   score[i, g] = sum_j adjn[g, i, j] * pre[j, g] + c_out
    # done as 8 VPU MACs of (8, G) adjacency slabs vs sublane-broadcast pre[j].
    acc = adj_ref[0, 0] * pre[0]
    for j in range(1, N_NODES):
        acc = acc + adj_ref[0, j] * pre[j]
    out_ref[0] = acc + c_out


def init_params(key):
    ks = jax.random.split(key, 7)
    w1 = jax.random.normal(ks[0], (IN_DIM, HID), jnp.float32) * 0.1
    b1 = jax.random.normal(ks[1], (1, HID), jnp.float32) * 0.05   # cancels under BN
    gamma = 1.0 + 0.1 * jax.random.normal(ks[2], (1, HID), jnp.float32)
    beta = 0.05 * jax.random.normal(ks[3], (1, HID), jnp.float32)
    prelu = jnp.full((1, 1), 0.25, jnp.float32)
    w2 = jax.random.normal(ks[4], (HID, HID), jnp.float32) * 0.1
    b2 = jax.random.normal(ks[5], (1, HID), jnp.float32) * 0.01
    wg = jax.random.normal(ks[6], (HID, HID), jnp.float32) * 0.1
    bg = 0.01 * jnp.ones((1, HID), jnp.float32)
    wf = jax.random.normal(jax.random.fold_in(key, 99), (HID, 1), jnp.float32) * 0.1
    bf = jnp.full((1, 1), 0.02, jnp.float32)
    return (w1, b1, gamma, beta, prelu, w2, b2, wg, bg, wf, bf)


@jax.jit
def gcnface_forward(x, adj, params):
    """x: (B, N, 2) node features, adj: (B, N, N) face adjacency -> (B, N) scores."""
    (w1, b1, gamma, beta, prelu, w2, b2, wg, bg, wf, bf) = params
    # b1 is intentionally unused: training-mode BatchNorm subtracts the
    # per-graph mean of x @ w1 + b1, so the Linear bias cancels exactly.
    del b1

    B = x.shape[0]
    G = GRAPHS_PER_TILE
    pad = (-B) % G
    if pad:  # zero-pad to whole tiles (padded graphs get adjn = I, var = 0: finite, discarded)
        x = jnp.concatenate([x, jnp.zeros((pad, N_NODES, IN_DIM), x.dtype)], 0)
        adj = jnp.concatenate([adj, jnp.zeros((pad, N_NODES, N_NODES), adj.dtype)], 0)
    bp = B + pad
    t_tiles = bp // G

    # Symmetric-normalized adjacency D^-1/2 (A+I) D^-1/2 per graph, packed
    # linearly in graphs (64 floats/graph): adjp[t, j, i, g] = adjn[t*G+g, i, j].
    a_hat = adj.astype(jnp.float32) + jnp.eye(N_NODES, dtype=jnp.float32)
    dinv = jax.lax.rsqrt(jnp.sum(a_hat, axis=-1))                 # deg >= 1
    adjn = a_hat * dinv[:, :, None] * dinv[:, None, :]            # (Bp, N, N)
    adjp = adjn.reshape(t_tiles, G, N_NODES, N_NODES).transpose(0, 3, 2, 1)

    # Node features with graphs on the lane axis: x_t[t, f, n, g] = x[t*G+g, n, f].
    x_t = (x.astype(jnp.float32)
            .reshape(t_tiles, G, N_NODES, IN_DIM)
            .transpose(0, 3, 2, 1))

    # Fold Dropout(p=0) -> Linear(32,32) -> GCN weight -> Linear(32,1) into one
    # (32,1) vector plus two scalars (exact up to fp reassociation).
    wfold = w2 @ wg @ wf                       # (32, 1)
    c2 = (b2 @ wg @ wf)[0, 0]                  # propagated through adjn
    c_out = (bg @ wf)[0, 0] + bf[0, 0]         # added after propagation

    pmat = jnp.concatenate([w1.T, gamma.T, beta.T, wfold], axis=1)   # (HID, NPACK)
    scal = jnp.stack([prelu[0, 0], c2, c_out]).astype(jnp.float32)   # (3,) -> SMEM

    cost = pl.CostEstimate(
        flops=4200 * bp,
        transcendentals=HID * bp,
        bytes_accessed=(IN_DIM * N_NODES + N_NODES * N_NODES + N_NODES) * 4 * bp)

    out = pl.pallas_call(
        gcnface_kernel,
        out_shape=jax.ShapeDtypeStruct((t_tiles, N_NODES, G), jnp.float32),
        grid_spec=pltpu.PrefetchScalarGridSpec(
            num_scalar_prefetch=0,
            grid=(t_tiles,),
            in_specs=[
                pl.BlockSpec((1, IN_DIM, N_NODES, G), lambda t: (t, 0, 0, 0)),   # x tile
                pl.BlockSpec((1, N_NODES, N_NODES, G), lambda t: (t, 0, 0, 0)),  # packed adjn
                pl.BlockSpec((HID, NPACK), lambda t: (0, 0)),                    # resident params
                pl.BlockSpec(memory_space=pltpu.MemorySpace.SMEM),               # 3 scalars
            ],
            out_specs=pl.BlockSpec((1, N_NODES, G), lambda t: (t, 0, 0)),
        ),
        compiler_params=pltpu.CompilerParams(
            # near-zero impact on single-TC v5e/v6e; shards steps across both TCs on v7x.
            dimension_semantics=("parallel",)),
        cost_estimate=cost,
    )(x_t, adjp, pmat, scal)

    return out.transpose(0, 2, 1).reshape(bp, N_NODES)[:B]           # (B, N)


def reference_forward(x, adj, params):
    """Plain-JAX reference of the unfused per-graph forward."""
    (w1, b1, gamma, beta, prelu, w2, b2, wg, bg, wf, bf) = params
    h = x @ w1 + b1                                               # (B, N, 32)
    mean = jnp.mean(h, axis=1, keepdims=True)
    var = jnp.mean((h - mean) ** 2, axis=1, keepdims=True)
    h = (h - mean) * jax.lax.rsqrt(var + EPS) * gamma + beta
    h = jnp.where(h >= 0, h, prelu[0, 0] * h)
    h = h @ w2 + b2
    a_hat = adj + jnp.eye(N_NODES, dtype=jnp.float32)
    dinv = jax.lax.rsqrt(jnp.sum(a_hat, axis=-1))
    adjn = a_hat * dinv[:, :, None] * dinv[:, None, :]
    hg = jnp.einsum('bij,bjk->bik', adjn, h @ wg) + bg
    return (hg @ wf + bf)[..., 0]                                 # (B, N)


if __name__ == "__main__":
    B = 300   # small graph batch; exercises zero-padding and a 2-step grid
    key = jax.random.PRNGKey(0)
    kx, ka = jax.random.split(key)
    x = jax.random.normal(kx, (B, N_NODES, IN_DIM), dtype=jnp.float32)

    # Deterministic random symmetric face adjacency per graph (zero diagonal).
    upper = jnp.triu(
        jax.random.bernoulli(ka, 0.4, (B, N_NODES, N_NODES)).astype(jnp.float32), k=1)
    adj = upper + jnp.swapaxes(upper, -1, -2)

    params = init_params(jax.random.PRNGKey(42))

    scores = jax.block_until_ready(gcnface_forward(x, adj, params))
    assert scores.shape == (B, N_NODES)
    assert scores.dtype == jnp.float32
    assert bool(jnp.all(jnp.isfinite(scores)))

    ref = reference_forward(x, adj, params)
    max_err = float(jnp.max(jnp.abs(scores - ref)))
    # Tolerance covers folded weights / centered-BN fp reassociation (err ~1e-6).
    assert max_err < 5e-3, f"kernel vs reference mismatch: {max_err}"

    print("KERNEL_OK")
</pallas_src>

<mosaic_0001>
module attributes {stable_mosaic.version = 11 : i64} {
  func.func @gcnface_kernel(%arg0: i32, %arg1: memref<1x2x8x256xf32, #tpu.memory_space<vmem>>, %arg2: memref<1x8x8x256xf32, #tpu.memory_space<vmem>>, %arg3: memref<32x5xf32, #tpu.memory_space<vmem>>, %arg4: memref<3xf32, #tpu.memory_space<smem>>, %arg5: memref<1x8x256xf32, #tpu.memory_space<vmem>>) attributes {dimension_semantics = [#tpu.dimension_semantics<parallel>], iteration_bounds = array<i64: 2>, scalar_prefetch = 0 : i64, scratch_operands = 0 : i64, tpu.core_type = #tpu.core_type<tc>, window_params = [{transform_indices = @transform_0, window_bounds = array<i64: 1, 2, 8, 256>}, {transform_indices = @transform_1, window_bounds = array<i64: 1, 8, 8, 256>}, {pipeline_mode = #tpu.pipeline_mode<synchronous>, transform_indices = @transform_2, window_bounds = array<i64: 32, 5>}, {transform_indices = @transform_3, window_bounds = array<i64: 3>}, {transform_indices = @transform_4, window_bounds = array<i64: 1, 8, 256>}]} {
    %c0 = arith.constant 0 : index
    %c0_0 = arith.constant 0 : index
    %0 = vector.load %arg3[%c0, %c0_0] : memref<32x5xf32, #tpu.memory_space<vmem>>, vector<32x1xf32>
    %c0_1 = arith.constant 0 : index
    %c1 = arith.constant 1 : index
    %1 = vector.load %arg3[%c0_1, %c1] : memref<32x5xf32, #tpu.memory_space<vmem>>, vector<32x1xf32>
    %c0_2 = arith.constant 0 : index
    %c2 = arith.constant 2 : index
    %2 = vector.load %arg3[%c0_2, %c2] : memref<32x5xf32, #tpu.memory_space<vmem>>, vector<32x1xf32>
    %c0_3 = arith.constant 0 : index
    %c3 = arith.constant 3 : index
    %3 = vector.load %arg3[%c0_3, %c3] : memref<32x5xf32, #tpu.memory_space<vmem>>, vector<32x1xf32>
    %c0_4 = arith.constant 0 : index
    %c4 = arith.constant 4 : index
    %4 = vector.load %arg3[%c0_4, %c4] : memref<32x5xf32, #tpu.memory_space<vmem>>, vector<32x1xf32>
    %c0_5 = arith.constant 0 : index
    %5 = memref.load %arg4[%c0_5] : memref<3xf32, #tpu.memory_space<smem>>
    %c1_6 = arith.constant 1 : index
    %6 = memref.load %arg4[%c1_6] : memref<3xf32, #tpu.memory_space<smem>>
    %c2_7 = arith.constant 2 : index
    %7 = memref.load %arg4[%c2_7] : memref<3xf32, #tpu.memory_space<smem>>
    %c0_8 = arith.constant 0 : index
    %c0_9 = arith.constant 0 : index
    %c0_10 = arith.constant 0 : index
    %c0_11 = arith.constant 0 : index
    %8 = vector.load %arg1[%c0_8, %c0_9, %c0_10, %c0_11] : memref<1x2x8x256xf32, #tpu.memory_space<vmem>>, vector<1x1x1x256xf32>
    %9 = vector.shape_cast %8 : vector<1x1x1x256xf32> to vector<1x256xf32>
    %c0_12 = arith.constant 0 : index
    %c0_13 = arith.constant 0 : index
    %c1_14 = arith.constant 1 : index
    %c0_15 = arith.constant 0 : index
    %10 = vector.load %arg1[%c0_12, %c0_13, %c1_14, %c0_15] : memref<1x2x8x256xf32, #tpu.memory_space<vmem>>, vector<1x1x1x256xf32>
    %11 = vector.shape_cast %10 : vector<1x1x1x256xf32> to vector<1x256xf32>
    %c0_16 = arith.constant 0 : index
    %c0_17 = arith.constant 0 : index
    %c2_18 = arith.constant 2 : index
    %c0_19 = arith.constant 0 : index
    %12 = vector.load %arg1[%c0_16, %c0_17, %c2_18, %c0_19] : memref<1x2x8x256xf32, #tpu.memory_space<vmem>>, vector<1x1x1x256xf32>
    %13 = vector.shape_cast %12 : vector<1x1x1x256xf32> to vector<1x256xf32>
    %c0_20 = arith.constant 0 : index
    %c0_21 = arith.constant 0 : index
    %c3_22 = arith.constant 3 : index
    %c0_23 = arith.constant 0 : index
    %14 = vector.load %arg1[%c0_20, %c0_21, %c3_22, %c0_23] : memref<1x2x8x256xf32, #tpu.memory_space<vmem>>, vector<1x1x1x256xf32>
    %15 = vector.shape_cast %14 : vector<1x1x1x256xf32> to vector<1x256xf32>
    %c0_24 = arith.constant 0 : index
    %c0_25 = arith.constant 0 : index
    %c4_26 = arith.constant 4 : index
    %c0_27 = arith.constant 0 : index
    %16 = vector.load %arg1[%c0_24, %c0_25, %c4_26, %c0_27] : memref<1x2x8x256xf32, #tpu.memory_space<vmem>>, vector<1x1x1x256xf32>
    %17 = vector.shape_cast %16 : vector<1x1x1x256xf32> to vector<1x256xf32>
    %c0_28 = arith.constant 0 : index
    %c0_29 = arith.constant 0 : index
    %c5 = arith.constant 5 : index
    %c0_30 = arith.constant 0 : index
    %18 = vector.load %arg1[%c0_28, %c0_29, %c5, %c0_30] : memref<1x2x8x256xf32, #tpu.memory_space<vmem>>, vector<1x1x1x256xf32>
    %19 = vector.shape_cast %18 : vector<1x1x1x256xf32> to vector<1x256xf32>
    %c0_31 = arith.constant 0 : index
    %c0_32 = arith.constant 0 : index
    %c6 = arith.constant 6 : index
    %c0_33 = arith.constant 0 : index
    %20 = vector.load %arg1[%c0_31, %c0_32, %c6, %c0_33] : memref<1x2x8x256xf32, #tpu.memory_space<vmem>>, vector<1x1x1x256xf32>
    %21 = vector.shape_cast %20 : vector<1x1x1x256xf32> to vector<1x256xf32>
    %c0_34 = arith.constant 0 : index
    %c0_35 = arith.constant 0 : index
    %c7 = arith.constant 7 : index
    %c0_36 = arith.constant 0 : index
    %22 = vector.load %arg1[%c0_34, %c0_35, %c7, %c0_36] : memref<1x2x8x256xf32, #tpu.memory_space<vmem>>, vector<1x1x1x256xf32>
    %23 = vector.shape_cast %22 : vector<1x1x1x256xf32> to vector<1x256xf32>
    %c0_37 = arith.constant 0 : index
    %c1_38 = arith.constant 1 : index
    %c0_39 = arith.constant 0 : index
    %c0_40 = arith.constant 0 : index
    %24 = vector.load %arg1[%c0_37, %c1_38, %c0_39, %c0_40] : memref<1x2x8x256xf32, #tpu.memory_space<vmem>>, vector<1x1x1x256xf32>
    %25 = vector.shape_cast %24 : vector<1x1x1x256xf32> to vector<1x256xf32>
    %c0_41 = arith.constant 0 : index
    %c1_42 = arith.constant 1 : index
    %c1_43 = arith.constant 1 : index
    %c0_44 = arith.constant 0 : index
    %26 = vector.load %arg1[%c0_41, %c1_42, %c1_43, %c0_44] : memref<1x2x8x256xf32, #tpu.memory_space<vmem>>, vector<1x1x1x256xf32>
    %27 = vector.shape_cast %26 : vector<1x1x1x256xf32> to vector<1x256xf32>
    %c0_45 = arith.constant 0 : index
    %c1_46 = arith.constant 1 : index
    %c2_47 = arith.constant 2 : index
    %c0_48 = arith.constant 0 : index
    %28 = vector.load %arg1[%c0_45, %c1_46, %c2_47, %c0_48] : memref<1x2x8x256xf32, #tpu.memory_space<vmem>>, vector<1x1x1x256xf32>
    %29 = vector.shape_cast %28 : vector<1x1x1x256xf32> to vector<1x256xf32>
    %c0_49 = arith.constant 0 : index
    %c1_50 = arith.constant 1 : index
    %c3_51 = arith.constant 3 : index
    %c0_52 = arith.constant 0 : index
    %30 = vector.load %arg1[%c0_49, %c1_50, %c3_51, %c0_52] : memref<1x2x8x256xf32, #tpu.memory_space<vmem>>, vector<1x1x1x256xf32>
    %31 = vector.shape_cast %30 : vector<1x1x1x256xf32> to vector<1x256xf32>
    %c0_53 = arith.constant 0 : index
    %c1_54 = arith.constant 1 : index
    %c4_55 = arith.constant 4 : index
    %c0_56 = arith.constant 0 : index
    %32 = vector.load %arg1[%c0_53, %c1_54, %c4_55, %c0_56] : memref<1x2x8x256xf32, #tpu.memory_space<vmem>>, vector<1x1x1x256xf32>
    %33 = vector.shape_cast %32 : vector<1x1x1x256xf32> to vector<1x256xf32>
    %c0_57 = arith.constant 0 : index
    %c1_58 = arith.constant 1 : index
    %c5_59 = arith.constant 5 : index
    %c0_60 = arith.constant 0 : index
    %34 = vector.load %arg1[%c0_57, %c1_58, %c5_59, %c0_60] : memref<1x2x8x256xf32, #tpu.memory_space<vmem>>, vector<1x1x1x256xf32>
    %35 = vector.shape_cast %34 : vector<1x1x1x256xf32> to vector<1x256xf32>
    %c0_61 = arith.constant 0 : index
    %c1_62 = arith.constant 1 : index
    %c6_63 = arith.constant 6 : index
    %c0_64 = arith.constant 0 : index
    %36 = vector.load %arg1[%c0_61, %c1_62, %c6_63, %c0_64] : memref<1x2x8x256xf32, #tpu.memory_space<vmem>>, vector<1x1x1x256xf32>
    %37 = vector.shape_cast %36 : vector<1x1x1x256xf32> to vector<1x256xf32>
    %c0_65 = arith.constant 0 : index
    %c1_66 = arith.constant 1 : index
    %c7_67 = arith.constant 7 : index
    %c0_68 = arith.constant 0 : index
    %38 = vector.load %arg1[%c0_65, %c1_66, %c7_67, %c0_68] : memref<1x2x8x256xf32, #tpu.memory_space<vmem>>, vector<1x1x1x256xf32>
    %39 = vector.shape_cast %38 : vector<1x1x1x256xf32> to vector<1x256xf32>
    %40 = arith.addf %9, %11 : vector<1x256xf32>
    %41 = arith.addf %25, %27 : vector<1x256xf32>
    %42 = arith.addf %40, %13 : vector<1x256xf32>
    %43 = arith.addf %41, %29 : vector<1x256xf32>
    %44 = arith.addf %42, %15 : vector<1x256xf32>
    %45 = arith.addf %43, %31 : vector<1x256xf32>
    %46 = arith.addf %44, %17 : vector<1x256xf32>
    %47 = arith.addf %45, %33 : vector<1x256xf32>
    %48 = arith.addf %46, %19 : vector<1x256xf32>
    %49 = arith.addf %47, %35 : vector<1x256xf32>
    %50 = arith.addf %48, %21 : vector<1x256xf32>
    %51 = arith.addf %49, %37 : vector<1x256xf32>
    %52 = arith.addf %50, %23 : vector<1x256xf32>
    %53 = arith.addf %51, %39 : vector<1x256xf32>
    %cst = arith.constant 1.250000e-01 : f32
    %54 = vector.broadcast %cst : f32 to vector<1x256xf32>
    %55 = arith.mulf %52, %54 : vector<1x256xf32>
    %cst_69 = arith.constant 1.250000e-01 : f32
    %56 = vector.broadcast %cst_69 : f32 to vector<1x256xf32>
    %57 = arith.mulf %53, %56 : vector<1x256xf32>
    %58 = arith.subf %9, %55 : vector<1x256xf32>
    %59 = arith.subf %11, %55 : vector<1x256xf32>
    %60 = arith.subf %13, %55 : vector<1x256xf32>
    %61 = arith.subf %15, %55 : vector<1x256xf32>
    %62 = arith.subf %17, %55 : vector<1x256xf32>
    %63 = arith.subf %19, %55 : vector<1x256xf32>
    %64 = arith.subf %21, %55 : vector<1x256xf32>
    %65 = arith.subf %23, %55 : vector<1x256xf32>
    %66 = arith.subf %25, %57 : vector<1x256xf32>
    %67 = arith.subf %27, %57 : vector<1x256xf32>
    %68 = arith.subf %29, %57 : vector<1x256xf32>
    %69 = arith.subf %31, %57 : vector<1x256xf32>
    %70 = arith.subf %33, %57 : vector<1x256xf32>
    %71 = arith.subf %35, %57 : vector<1x256xf32>
    %72 = arith.subf %37, %57 : vector<1x256xf32>
    %73 = arith.subf %39, %57 : vector<1x256xf32>
    %74 = vector.broadcast %0 : vector<32x1xf32> to vector<32x256xf32>
    %75 = vector.broadcast %58 : vector<1x256xf32> to vector<32x256xf32>
    %76 = arith.mulf %74, %75 : vector<32x256xf32>
    %77 = vector.broadcast %1 : vector<32x1xf32> to vector<32x256xf32>
    %78 = vector.broadcast %66 : vector<1x256xf32> to vector<32x256xf32>
    %79 = arith.mulf %77, %78 : vector<32x256xf32>
    %80 = arith.addf %76, %79 : vector<32x256xf32>
    %81 = arith.mulf %80, %80 : vector<32x256xf32>
    %82 = vector.broadcast %0 : vector<32x1xf32> to vector<32x256xf32>
    %83 = vector.broadcast %59 : vector<1x256xf32> to vector<32x256xf32>
    %84 = arith.mulf %82, %83 : vector<32x256xf32>
    %85 = vector.broadcast %1 : vector<32x1xf32> to vector<32x256xf32>
    %86 = vector.broadcast %67 : vector<1x256xf32> to vector<32x256xf32>
    %87 = arith.mulf %85, %86 : vector<32x256xf32>
    %88 = arith.addf %84, %87 : vector<32x256xf32>
    %89 = arith.mulf %88, %88 : vector<32x256xf32>
    %90 = arith.addf %81, %89 : vector<32x256xf32>
    %91 = vector.broadcast %0 : vector<32x1xf32> to vector<32x256xf32>
    %92 = vector.broadcast %60 : vector<1x256xf32> to vector<32x256xf32>
    %93 = arith.mulf %91, %92 : vector<32x256xf32>
    %94 = vector.broadcast %1 : vector<32x1xf32> to vector<32x256xf32>
    %95 = vector.broadcast %68 : vector<1x256xf32> to vector<32x256xf32>
    %96 = arith.mulf %94, %95 : vector<32x256xf32>
    %97 = arith.addf %93, %96 : vector<32x256xf32>
    %98 = arith.mulf %97, %97 : vector<32x256xf32>
    %99 = arith.addf %90, %98 : vector<32x256xf32>
    %100 = vector.broadcast %0 : vector<32x1xf32> to vector<32x256xf32>
    %101 = vector.broadcast %61 : vector<1x256xf32> to vector<32x256xf32>
    %102 = arith.mulf %100, %101 : vector<32x256xf32>
    %103 = vector.broadcast %1 : vector<32x1xf32> to vector<32x256xf32>
    %104 = vector.broadcast %69 : vector<1x256xf32> to vector<32x256xf32>
    %105 = arith.mulf %103, %104 : vector<32x256xf32>
    %106 = arith.addf %102, %105 : vector<32x256xf32>
    %107 = arith.mulf %106, %106 : vector<32x256xf32>
    %108 = arith.addf %99, %107 : vector<32x256xf32>
    %109 = vector.broadcast %0 : vector<32x1xf32> to vector<32x256xf32>
    %110 = vector.broadcast %62 : vector<1x256xf32> to vector<32x256xf32>
    %111 = arith.mulf %109, %110 : vector<32x256xf32>
    %112 = vector.broadcast %1 : vector<32x1xf32> to vector<32x256xf32>
    %113 = vector.broadcast %70 : vector<1x256xf32> to vector<32x256xf32>
    %114 = arith.mulf %112, %113 : vector<32x256xf32>
    %115 = arith.addf %111, %114 : vector<32x256xf32>
    %116 = arith.mulf %115, %115 : vector<32x256xf32>
    %117 = arith.addf %108, %116 : vector<32x256xf32>
    %118 = vector.broadcast %0 : vector<32x1xf32> to vector<32x256xf32>
    %119 = vector.broadcast %63 : vector<1x256xf32> to vector<32x256xf32>
    %120 = arith.mulf %118, %119 : vector<32x256xf32>
    %121 = vector.broadcast %1 : vector<32x1xf32> to vector<32x256xf32>
    %122 = vector.broadcast %71 : vector<1x256xf32> to vector<32x256xf32>
    %123 = arith.mulf %121, %122 : vector<32x256xf32>
    %124 = arith.addf %120, %123 : vector<32x256xf32>
    %125 = arith.mulf %124, %124 : vector<32x256xf32>
    %126 = arith.addf %117, %125 : vector<32x256xf32>
    %127 = vector.broadcast %0 : vector<32x1xf32> to vector<32x256xf32>
    %128 = vector.broadcast %64 : vector<1x256xf32> to vector<32x256xf32>
    %129 = arith.mulf %127, %128 : vector<32x256xf32>
    %130 = vector.broadcast %1 : vector<32x1xf32> to vector<32x256xf32>
    %131 = vector.broadcast %72 : vector<1x256xf32> to vector<32x256xf32>
    %132 = arith.mulf %130, %131 : vector<32x256xf32>
    %133 = arith.addf %129, %132 : vector<32x256xf32>
    %134 = arith.mulf %133, %133 : vector<32x256xf32>
    %135 = arith.addf %126, %134 : vector<32x256xf32>
    %136 = vector.broadcast %0 : vector<32x1xf32> to vector<32x256xf32>
    %137 = vector.broadcast %65 : vector<1x256xf32> to vector<32x256xf32>
    %138 = arith.mulf %136, %137 : vector<32x256xf32>
    %139 = vector.broadcast %1 : vector<32x1xf32> to vector<32x256xf32>
    %140 = vector.broadcast %73 : vector<1x256xf32> to vector<32x256xf32>
    %141 = arith.mulf %139, %140 : vector<32x256xf32>
    %142 = arith.addf %138, %141 : vector<32x256xf32>
    %143 = arith.mulf %142, %142 : vector<32x256xf32>
    %144 = arith.addf %135, %143 : vector<32x256xf32>
    %cst_70 = arith.constant 1.250000e-01 : f32
    %145 = vector.broadcast %cst_70 : f32 to vector<32x256xf32>
    %146 = arith.mulf %144, %145 : vector<32x256xf32>
    %cst_71 = arith.constant 9.99999974E-6 : f32
    %147 = vector.broadcast %cst_71 : f32 to vector<32x256xf32>
    %148 = arith.addf %146, %147 : vector<32x256xf32>
    %149 = math.rsqrt %148 : vector<32x256xf32>
    %150 = vector.broadcast %2 : vector<32x1xf32> to vector<32x256xf32>
    %151 = arith.mulf %149, %150 : vector<32x256xf32>
    %152 = vector.broadcast %0 : vector<32x1xf32> to vector<32x256xf32>
    %153 = vector.broadcast %58 : vector<1x256xf32> to vector<32x256xf32>
    %154 = arith.mulf %152, %153 : vector<32x256xf32>
    %155 = vector.broadcast %1 : vector<32x1xf32> to vector<32x256xf32>
    %156 = vector.broadcast %66 : vector<1x256xf32> to vector<32x256xf32>
    %157 = arith.mulf %155, %156 : vector<32x256xf32>
    %158 = arith.addf %154, %157 : vector<32x256xf32>
    %159 = arith.mulf %158, %151 : vector<32x256xf32>
    %160 = vector.broadcast %3 : vector<32x1xf32> to vector<32x256xf32>
    %161 = arith.addf %159, %160 : vector<32x256xf32>
    %cst_72 = arith.constant 0.000000e+00 : f32
    %162 = vector.broadcast %cst_72 : f32 to vector<32x256xf32>
    %163 = arith.cmpf oge, %161, %162 : vector<32x256xf32>
    %164 = vector.broadcast %5 : f32 to vector<32x256xf32>
    %165 = arith.mulf %164, %161 : vector<32x256xf32>
    %166 = arith.select %163, %161, %165 : vector<32x256xi1>, vector<32x256xf32>
    %167 = vector.broadcast %4 : vector<32x1xf32> to vector<32x256xf32>
    %168 = arith.mulf %166, %167 : vector<32x256xf32>
    %cst_73 = arith.constant dense<0.000000e+00> : vector<256xf32>
    %169 = vector.multi_reduction <add>, %168, %cst_73 [0] : vector<32x256xf32> to vector<256xf32>
    %170 = vector.shape_cast %169 : vector<256xf32> to vector<1x256xf32>
    %171 = vector.broadcast %6 : f32 to vector<1x256xf32>
    %172 = arith.addf %170, %171 : vector<1x256xf32>
    %173 = vector.broadcast %0 : vector<32x1xf32> to vector<32x256xf32>
    %174 = vector.broadcast %59 : vector<1x256xf32> to vector<32x256xf32>
    %175 = arith.mulf %173, %174 : vector<32x256xf32>
    %176 = vector.broadcast %1 : vector<32x1xf32> to vector<32x256xf32>
    %177 = vector.broadcast %67 : vector<1x256xf32> to vector<32x256xf32>
    %178 = arith.mulf %176, %177 : vector<32x256xf32>
    %179 = arith.addf %175, %178 : vector<32x256xf32>
    %180 = arith.mulf %179, %151 : vector<32x256xf32>
    %181 = vector.broadcast %3 : vector<32x1xf32> to vector<32x256xf32>
    %182 = arith.addf %180, %181 : vector<32x256xf32>
    %cst_74 = arith.constant 0.000000e+00 : f32
    %183 = vector.broadcast %cst_74 : f32 to vector<32x256xf32>
    %184 = arith.cmpf oge, %182, %183 : vector<32x256xf32>
    %185 = vector.broadcast %5 : f32 to vector<32x256xf32>
    %186 = arith.mulf %185, %182 : vector<32x256xf32>
    %187 = arith.select %184, %182, %186 : vector<32x256xi1>, vector<32x256xf32>
    %188 = vector.broadcast %4 : vector<32x1xf32> to vector<32x256xf32>
    %189 = arith.mulf %187, %188 : vector<32x256xf32>
    %cst_75 = arith.constant dense<0.000000e+00> : vector<256xf32>
    %190 = vector.multi_reduction <add>, %189, %cst_75 [0] : vector<32x256xf32> to vector<256xf32>
    %191 = vector.shape_cast %190 : vector<256xf32> to vector<1x256xf32>
    %192 = vector.broadcast %6 : f32 to vector<1x256xf32>
    %193 = arith.addf %191, %192 : vector<1x256xf32>
    %194 = vector.broadcast %0 : vector<32x1xf32> to vector<32x256xf32>
    %195 = vector.broadcast %60 : vector<1x256xf32> to vector<32x256xf32>
    %196 = arith.mulf %194, %195 : vector<32x256xf32>
    %197 = vector.broadcast %1 : vector<32x1xf32> to vector<32x256xf32>
    %198 = vector.broadcast %68 : vector<1x256xf32> to vector<32x256xf32>
    %199 = arith.mulf %197, %198 : vector<32x256xf32>
    %200 = arith.addf %196, %199 : vector<32x256xf32>
    %201 = arith.mulf %200, %151 : vector<32x256xf32>
    %202 = vector.broadcast %3 : vector<32x1xf32> to vector<32x256xf32>
    %203 = arith.addf %201, %202 : vector<32x256xf32>
    %cst_76 = arith.constant 0.000000e+00 : f32
    %204 = vector.broadcast %cst_76 : f32 to vector<32x256xf32>
    %205 = arith.cmpf oge, %203, %204 : vector<32x256xf32>
    %206 = vector.broadcast %5 : f32 to vector<32x256xf32>
    %207 = arith.mulf %206, %203 : vector<32x256xf32>
    %208 = arith.select %205, %203, %207 : vector<32x256xi1>, vector<32x256xf32>
    %209 = vector.broadcast %4 : vector<32x1xf32> to vector<32x256xf32>
    %210 = arith.mulf %208, %209 : vector<32x256xf32>
    %cst_77 = arith.constant dense<0.000000e+00> : vector<256xf32>
    %211 = vector.multi_reduction <add>, %210, %cst_77 [0] : vector<32x256xf32> to vector<256xf32>
    %212 = vector.shape_cast %211 : vector<256xf32> to vector<1x256xf32>
    %213 = vector.broadcast %6 : f32 to vector<1x256xf32>
    %214 = arith.addf %212, %213 : vector<1x256xf32>
    %215 = vector.broadcast %0 : vector<32x1xf32> to vector<32x256xf32>
    %216 = vector.broadcast %61 : vector<1x256xf32> to vector<32x256xf32>
    %217 = arith.mulf %215, %216 : vector<32x256xf32>
    %218 = vector.broadcast %1 : vector<32x1xf32> to vector<32x256xf32>
    %219 = vector.broadcast %69 : vector<1x256xf32> to vector<32x256xf32>
    %220 = arith.mulf %218, %219 : vector<32x256xf32>
    %221 = arith.addf %217, %220 : vector<32x256xf32>
    %222 = arith.mulf %221, %151 : vector<32x256xf32>
    %223 = vector.broadcast %3 : vector<32x1xf32> to vector<32x256xf32>
    %224 = arith.addf %222, %223 : vector<32x256xf32>
    %cst_78 = arith.constant 0.000000e+00 : f32
    %225 = vector.broadcast %cst_78 : f32 to vector<32x256xf32>
    %226 = arith.cmpf oge, %224, %225 : vector<32x256xf32>
    %227 = vector.broadcast %5 : f32 to vector<32x256xf32>
    %228 = arith.mulf %227, %224 : vector<32x256xf32>
    %229 = arith.select %226, %224, %228 : vector<32x256xi1>, vector<32x256xf32>
    %230 = vector.broadcast %4 : vector<32x1xf32> to vector<32x256xf32>
    %231 = arith.mulf %229, %230 : vector<32x256xf32>
    %cst_79 = arith.constant dense<0.000000e+00> : vector<256xf32>
    %232 = vector.multi_reduction <add>, %231, %cst_79 [0] : vector<32x256xf32> to vector<256xf32>
    %233 = vector.shape_cast %232 : vector<256xf32> to vector<1x256xf32>
    %234 = vector.broadcast %6 : f32 to vector<1x256xf32>
    %235 = arith.addf %233, %234 : vector<1x256xf32>
    %236 = vector.broadcast %0 : vector<32x1xf32> to vector<32x256xf32>
    %237 = vector.broadcast %62 : vector<1x256xf32> to vector<32x256xf32>
    %238 = arith.mulf %236, %237 : vector<32x256xf32>
    %239 = vector.broadcast %1 : vector<32x1xf32> to vector<32x256xf32>
    %240 = vector.broadcast %70 : vector<1x256xf32> to vector<32x256xf32>
    %241 = arith.mulf %239, %240 : vector<32x256xf32>
    %242 = arith.addf %238, %241 : vector<32x256xf32>
    %243 = arith.mulf %242, %151 : vector<32x256xf32>
    %244 = vector.broadcast %3 : vector<32x1xf32> to vector<32x256xf32>
    %245 = arith.addf %243, %244 : vector<32x256xf32>
    %cst_80 = arith.constant 0.000000e+00 : f32
    %246 = vector.broadcast %cst_80 : f32 to vector<32x256xf32>
    %247 = arith.cmpf oge, %245, %246 : vector<32x256xf32>
    %248 = vector.broadcast %5 : f32 to vector<32x256xf32>
    %249 = arith.mulf %248, %245 : vector<32x256xf32>
    %250 = arith.select %247, %245, %249 : vector<32x256xi1>, vector<32x256xf32>
    %251 = vector.broadcast %4 : vector<32x1xf32> to vector<32x256xf32>
    %252 = arith.mulf %250, %251 : vector<32x256xf32>
    %cst_81 = arith.constant dense<0.000000e+00> : vector<256xf32>
    %253 = vector.multi_reduction <add>, %252, %cst_81 [0] : vector<32x256xf32> to vector<256xf32>
    %254 = vector.shape_cast %253 : vector<256xf32> to vector<1x256xf32>
    %255 = vector.broadcast %6 : f32 to vector<1x256xf32>
    %256 = arith.addf %254, %255 : vector<1x256xf32>
    %257 = vector.broadcast %0 : vector<32x1xf32> to vector<32x256xf32>
    %258 = vector.broadcast %63 : vector<1x256xf32> to vector<32x256xf32>
    %259 = arith.mulf %257, %258 : vector<32x256xf32>
    %260 = vector.broadcast %1 : vector<32x1xf32> to vector<32x256xf32>
    %261 = vector.broadcast %71 : vector<1x256xf32> to vector<32x256xf32>
    %262 = arith.mulf %260, %261 : vector<32x256xf32>
    %263 = arith.addf %259, %262 : vector<32x256xf32>
    %264 = arith.mulf %263, %151 : vector<32x256xf32>
    %265 = vector.broadcast %3 : vector<32x1xf32> to vector<32x256xf32>
    %266 = arith.addf %264, %265 : vector<32x256xf32>
    %cst_82 = arith.constant 0.000000e+00 : f32
    %267 = vector.broadcast %cst_82 : f32 to vector<32x256xf32>
    %268 = arith.cmpf oge, %266, %267 : vector<32x256xf32>
    %269 = vector.broadcast %5 : f32 to vector<32x256xf32>
    %270 = arith.mulf %269, %266 : vector<32x256xf32>
    %271 = arith.select %268, %266, %270 : vector<32x256xi1>, vector<32x256xf32>
    %272 = vector.broadcast %4 : vector<32x1xf32> to vector<32x256xf32>
    %273 = arith.mulf %271, %272 : vector<32x256xf32>
    %cst_83 = arith.constant dense<0.000000e+00> : vector<256xf32>
    %274 = vector.multi_reduction <add>, %273, %cst_83 [0] : vector<32x256xf32> to vector<256xf32>
    %275 = vector.shape_cast %274 : vector<256xf32> to vector<1x256xf32>
    %276 = vector.broadcast %6 : f32 to vector<1x256xf32>
    %277 = arith.addf %275, %276 : vector<1x256xf32>
    %278 = vector.broadcast %0 : vector<32x1xf32> to vector<32x256xf32>
    %279 = vector.broadcast %64 : vector<1x256xf32> to vector<32x256xf32>
    %280 = arith.mulf %278, %279 : vector<32x256xf32>
    %281 = vector.broadcast %1 : vector<32x1xf32> to vector<32x256xf32>
    %282 = vector.broadcast %72 : vector<1x256xf32> to vector<32x256xf32>
    %283 = arith.mulf %281, %282 : vector<32x256xf32>
    %284 = arith.addf %280, %283 : vector<32x256xf32>
    %285 = arith.mulf %284, %151 : vector<32x256xf32>
    %286 = vector.broadcast %3 : vector<32x1xf32> to vector<32x256xf32>
    %287 = arith.addf %285, %286 : vector<32x256xf32>
    %cst_84 = arith.constant 0.000000e+00 : f32
    %288 = vector.broadcast %cst_84 : f32 to vector<32x256xf32>
    %289 = arith.cmpf oge, %287, %288 : vector<32x256xf32>
    %290 = vector.broadcast %5 : f32 to vector<32x256xf32>
    %291 = arith.mulf %290, %287 : vector<32x256xf32>
    %292 = arith.select %289, %287, %291 : vector<32x256xi1>, vector<32x256xf32>
    %293 = vector.broadcast %4 : vector<32x1xf32> to vector<32x256xf32>
    %294 = arith.mulf %292, %293 : vector<32x256xf32>
    %cst_85 = arith.constant dense<0.000000e+00> : vector<256xf32>
    %295 = vector.multi_reduction <add>, %294, %cst_85 [0] : vector<32x256xf32> to vector<256xf32>
    %296 = vector.shape_cast %295 : vector<256xf32> to vector<1x256xf32>
    %297 = vector.broadcast %6 : f32 to vector<1x256xf32>
    %298 = arith.addf %296, %297 : vector<1x256xf32>
    %299 = vector.broadcast %0 : vector<32x1xf32> to vector<32x256xf32>
    %300 = vector.broadcast %65 : vector<1x256xf32> to vector<32x256xf32>
    %301 = arith.mulf %299, %300 : vector<32x256xf32>
    %302 = vector.broadcast %1 : vector<32x1xf32> to vector<32x256xf32>
    %303 = vector.broadcast %73 : vector<1x256xf32> to vector<32x256xf32>
    %304 = arith.mulf %302, %303 : vector<32x256xf32>
    %305 = arith.addf %301, %304 : vector<32x256xf32>
    %306 = arith.mulf %305, %151 : vector<32x256xf32>
    %307 = vector.broadcast %3 : vector<32x1xf32> to vector<32x256xf32>
    %308 = arith.addf %306, %307 : vector<32x256xf32>
    %cst_86 = arith.constant 0.000000e+00 : f32
    %309 = vector.broadcast %cst_86 : f32 to vector<32x256xf32>
    %310 = arith.cmpf oge, %308, %309 : vector<32x256xf32>
    %311 = vector.broadcast %5 : f32 to vector<32x256xf32>
    %312 = arith.mulf %311, %308 : vector<32x256xf32>
    %313 = arith.select %310, %308, %312 : vector<32x256xi1>, vector<32x256xf32>
    %314 = vector.broadcast %4 : vector<32x1xf32> to vector<32x256xf32>
    %315 = arith.mulf %313, %314 : vector<32x256xf32>
    %cst_87 = arith.constant dense<0.000000e+00> : vector<256xf32>
    %316 = vector.multi_reduction <add>, %315, %cst_87 [0] : vector<32x256xf32> to vector<256xf32>
    %317 = vector.shape_cast %316 : vector<256xf32> to vector<1x256xf32>
    %318 = vector.broadcast %6 : f32 to vector<1x256xf32>
    %319 = arith.addf %317, %318 : vector<1x256xf32>
    %c0_88 = arith.constant 0 : index
    %c0_89 = arith.constant 0 : index
    %c0_90 = arith.constant 0 : index
    %c0_91 = arith.constant 0 : index
    %320 = vector.load %arg2[%c0_88, %c0_89, %c0_90, %c0_91] : memref<1x8x8x256xf32, #tpu.memory_space<vmem>>, vector<1x1x8x256xf32>
    %321 = vector.shape_cast %320 : vector<1x1x8x256xf32> to vector<8x256xf32>
    %322 = vector.broadcast %172 : vector<1x256xf32> to vector<8x256xf32>
    %323 = arith.mulf %321, %322 : vector<8x256xf32>
    %c0_92 = arith.constant 0 : index
    %c1_93 = arith.constant 1 : index
    %c0_94 = arith.constant 0 : index
    %c0_95 = arith.constant 0 : index
    %324 = vector.load %arg2[%c0_92, %c1_93, %c0_94, %c0_95] : memref<1x8x8x256xf32, #tpu.memory_space<vmem>>, vector<1x1x8x256xf32>
    %325 = vector.shape_cast %324 : vector<1x1x8x256xf32> to vector<8x256xf32>
    %326 = vector.broadcast %193 : vector<1x256xf32> to vector<8x256xf32>
    %327 = arith.mulf %325, %326 : vector<8x256xf32>
    %328 = arith.addf %323, %327 : vector<8x256xf32>
    %c0_96 = arith.constant 0 : index
    %c2_97 = arith.constant 2 : index
    %c0_98 = arith.constant 0 : index
    %c0_99 = arith.constant 0 : index
    %329 = vector.load %arg2[%c0_96, %c2_97, %c0_98, %c0_99] : memref<1x8x8x256xf32, #tpu.memory_space<vmem>>, vector<1x1x8x256xf32>
    %330 = vector.shape_cast %329 : vector<1x1x8x256xf32> to vector<8x256xf32>
    %331 = vector.broadcast %214 : vector<1x256xf32> to vector<8x256xf32>
    %332 = arith.mulf %330, %331 : vector<8x256xf32>
    %333 = arith.addf %328, %332 : vector<8x256xf32>
    %c0_100 = arith.constant 0 : index
    %c3_101 = arith.constant 3 : index
    %c0_102 = arith.constant 0 : index
    %c0_103 = arith.constant 0 : index
    %334 = vector.load %arg2[%c0_100, %c3_101, %c0_102, %c0_103] : memref<1x8x8x256xf32, #tpu.memory_space<vmem>>, vector<1x1x8x256xf32>
    %335 = vector.shape_cast %334 : vector<1x1x8x256xf32> to vector<8x256xf32>
    %336 = vector.broadcast %235 : vector<1x256xf32> to vector<8x256xf32>
    %337 = arith.mulf %335, %336 : vector<8x256xf32>
    %338 = arith.addf %333, %337 : vector<8x256xf32>
    %c0_104 = arith.constant 0 : index
    %c4_105 = arith.constant 4 : index
    %c0_106 = arith.constant 0 : index
    %c0_107 = arith.constant 0 : index
    %339 = vector.load %arg2[%c0_104, %c4_105, %c0_106, %c0_107] : memref<1x8x8x256xf32, #tpu.memory_space<vmem>>, vector<1x1x8x256xf32>
    %340 = vector.shape_cast %339 : vector<1x1x8x256xf32> to vector<8x256xf32>
    %341 = vector.broadcast %256 : vector<1x256xf32> to vector<8x256xf32>
    %342 = arith.mulf %340, %341 : vector<8x256xf32>
    %343 = arith.addf %338, %342 : vector<8x256xf32>
    %c0_108 = arith.constant 0 : index
    %c5_109 = arith.constant 5 : index
    %c0_110 = arith.constant 0 : index
    %c0_111 = arith.constant 0 : index
    %344 = vector.load %arg2[%c0_108, %c5_109, %c0_110, %c0_111] : memref<1x8x8x256xf32, #tpu.memory_space<vmem>>, vector<1x1x8x256xf32>
    %345 = vector.shape_cast %344 : vector<1x1x8x256xf32> to vector<8x256xf32>
    %346 = vector.broadcast %277 : vector<1x256xf32> to vector<8x256xf32>
    %347 = arith.mulf %345, %346 : vector<8x256xf32>
    %348 = arith.addf %343, %347 : vector<8x256xf32>
    %c0_112 = arith.constant 0 : index
    %c6_113 = arith.constant 6 : index
    %c0_114 = arith.constant 0 : index
    %c0_115 = arith.constant 0 : index
    %349 = vector.load %arg2[%c0_112, %c6_113, %c0_114, %c0_115] : memref<1x8x8x256xf32, #tpu.memory_space<vmem>>, vector<1x1x8x256xf32>
    %350 = vector.shape_cast %349 : vector<1x1x8x256xf32> to vector<8x256xf32>
    %351 = vector.broadcast %298 : vector<1x256xf32> to vector<8x256xf32>
    %352 = arith.mulf %350, %351 : vector<8x256xf32>
    %353 = arith.addf %348, %352 : vector<8x256xf32>
    %c0_116 = arith.constant 0 : index
    %c7_117 = arith.constant 7 : index
    %c0_118 = arith.constant 0 : index
    %c0_119 = arith.constant 0 : index
    %354 = vector.load %arg2[%c0_116, %c7_117, %c0_118, %c0_119] : memref<1x8x8x256xf32, #tpu.memory_space<vmem>>, vector<1x1x8x256xf32>
    %355 = vector.shape_cast %354 : vector<1x1x8x256xf32> to vector<8x256xf32>
    %356 = vector.broadcast %319 : vector<1x256xf32> to vector<8x256xf32>
    %357 = arith.mulf %355, %356 : vector<8x256xf32>
    %358 = arith.addf %353, %357 : vector<8x256xf32>
    %359 = vector.broadcast %7 : f32 to vector<8x256xf32>
    %360 = arith.addf %358, %359 : vector<8x256xf32>
    %c0_120 = arith.constant 0 : index
    %c0_121 = arith.constant 0 : index
    %c0_122 = arith.constant 0 : index
    %361 = vector.load %arg5[%c0_120, %c0_121, %c0_122] : memref<1x8x256xf32, #tpu.memory_space<vmem>>, vector<1x8x256xf32>
    %362 = vector.shape_cast %361 : vector<1x8x256xf32> to vector<8x256xf32>
    %363 = vector.shape_cast %360 : vector<8x256xf32> to vector<1x8x256xf32>
    tpu.vector_store %arg5[%c0_120, %c0_121, %c0_122], %363 {strides = array<i32>} : memref<1x8x256xf32, #tpu.memory_space<vmem>>, vector<1x8x256xf32>,
    return
  }
  func.func @transform_0(%arg0: i32) -> (i32, i32, i32, i32) {
    %c0_i32 = arith.constant 0 : i32
    %c0_i32_0 = arith.constant 0 : i32
    %c0_i32_1 = arith.constant 0 : i32
    %c0_i32_2 = arith.constant 0 : i32
    return %arg0, %c0_i32, %c0_i32_0, %c0_i32_1 : i32, i32, i32, i32
  }
  func.func @transform_1(%arg0: i32) -> (i32, i32, i32, i32) {
    %c0_i32 = arith.constant 0 : i32
    %c0_i32_0 = arith.constant 0 : i32
    %c0_i32_1 = arith.constant 0 : i32
    %c0_i32_2 = arith.constant 0 : i32
    return %arg0, %c0_i32, %c0_i32_0, %c0_i32_1 : i32, i32, i32, i32
  }
  func.func @transform_2(%arg0: i32) -> (i32, i32) {
    %c0_i32 = arith.constant 0 : i32
    %c0_i32_0 = arith.constant 0 : i32
    %c0_i32_1 = arith.constant 0 : i32
    return %c0_i32, %c0_i32_0 : i32, i32
  }
  func.func @transform_3(%arg0: i32) -> i32 {
    %c0_i32 = arith.constant 0 : i32
    %c0_i32_0 = arith.constant 0 : i32
    return %c0_i32 : i32
  }
  func.func @transform_4(%arg0: i32) -> (i32, i32, i32) {
    %c0_i32 = arith.constant 0 : i32
    %c0_i32_0 = arith.constant 0 : i32
    %c0_i32_1 = arith.constant 0 : i32
    return %arg0, %c0_i32, %c0_i32_0 : i32, i32, i32
  }
}

</mosaic_0001>

<bundles_post_ra>
// kernel: gcnface_forward.1
= control target key start
LH: loop header
LB: loop body
LE: loop exit
PB: predicated region body
PF: predicated region fallthrough
CT: control target
= control target key end

     0   :  { %9 = vsyncpa [#allocation3], 0  ;;  %s1732_s15 = smov 0   ;;  %s3275_s0 = inlined_call_operand.vmem [shape: f32[2,2,8,256], index: 0, kind: input, shape index: {}]   ;;  %s3276_s1 = inlined_call_operand.vmem [shape: f32[2,8,8,256], index: 1, kind: input, shape index: {}]   ;;  %s3277_s2 = inlined_call_operand.vmem [shape: f32[32,5], index: 2, kind: input, shape index: {}]   ;;  %s3278_s3 = inlined_call_operand.vmem [shape: f32[3], index: 3, kind: input, shape index: {}]   ;;  %s3279_s4 = inlined_call_operand.vmem [shape: f32[2,8,256], index: 4, kind: output, shape index: {}]  }
   0x1 LB: > { %s1738_s16 = sadd.s32 4294967295, %s1699_s15   ;;  %p1574_p0 = scmp.ge.s32.totalorder %s1699_s15, 1  ;;  %s1699_s15 = sphi %s1732_s15, %s15_s15  }
   0x2   : > { %p140_p1 = scmp.lt.s32.totalorder %s1699_s15, 3  ;;  %s155_s19 = sshll.u32 %s3278_s3, 4  ;;  %s156_s19 = int_to_ptr.vmem [resolvable:$true] %s155_s19 }
   0x3   : > { %p1629_p3 = scmp.eq.s32.totalorder %s1738_s16, 0  ;;  %s1701_s20 = smov [#allocation2]  }
   0x4   : > { %p141_p2 = pnand %p1574_p0, %p140_p1 }
   0x6   : > { %p1625_p4 = pneg %p141_p2  ;;  %184 = sbr.rel (%p141_p2) target bundleno = 392 (0x188), region = 36 }
   0x8   : > { %p1626_p5 = pnand %p1629_p3, %p1625_p4 }
   0xa   : > { %1628 = dma.vmem_to_smem (!%p1626_p5), %s156_s19, 16, %s1701_s20, [#allocation3]  }
   0xb   : > { %1694 = dma.done.wait (%p1629_p3), [#allocation3], 16  }
   0xc   : > { %1696 = vsyncadd (%p1629_p3), [#allocation3], 4294967280 }
   0xd   : > { %191 = sfence }
   0xe   : > { %v234_v0 = vld [vmem:[%s3277_s2 + $0x10] sm:$0xff]  ;;  %v232_v1 = vld [vmem:[%s3277_s2] sm:$0xff]  ;;  %v1702_v2 = vmov 1   ;;  %v1703_v3 = vmov 0   ;;  %v233_v4 = vld [vmem:[%s3277_s2 + $0x8] sm:$0xff]  ;;  %v1704_v6 = vmov 2  }
   0xf   : > { %1646 = vset.pattern.permute.xlu1 %v1702_v2  ;;  %1647 = vset.pattern.permute.xlu2 %v1703_v3  ;;  %v235_v5 = vld [vmem:[%s3277_s2 + $0x18] sm:$0xff]  ;;  %v1705_v7 = vmov 3   ;;  %v1706_v8 = vmov 4   ;;  %p217_p6 = scmp.lt.s32.totalorder %s1738_s16, 1  ;;  %s2356_s7 = sld [smem:[#allocation2]] }
  0x10   : > { %1645 = vset.pattern.permute.xlu0 %v1703_v3  ;;  %314 = vperm.xlu2 %1647, %v234_v0   ;;  %s3021_s8 = sld [smem:[#allocation2 + $0x1]] }
  0x11   : > { %336 = vperm.xlu1 %1646, %v232_v1   ;;  %304 = vperm.xlu0 %1645, %v232_v1   ;;  %s3537_s16 = smov (!%p217_p6, %s1738_s16), 1  ;;  %s1586_s13 = sld [smem:[#allocation2 + $0x2]] }
  0x12   : > { %s1618_s29 = sshll.u32 %s3537_s16, 5  ;;  %s1619_s9 = sshll.u32 %s3537_s16, 7 }
  0x13   : > { %s221_s6 = scalar_lea.vmem %s3275_s0, %s1618_s29  ;;  %s3224_s12 = scalar_lea.vmem %s3276_s1, %s1619_s9 }
  0x14   : > { %v239_v9 = vld [vmem:[%s221_s6] ss:$8 sm:$0x3]  ;;  %v1587_v10 = vld [vmem:[%s221_s6 + $0x1] ss:$8 sm:$0x3] }
  0x15   : > { %v1594_v11 = vld [vmem:[%s221_s6 + $0x10] ss:$8 sm:$0x3]  ;;  %v1595_v12 = vld [vmem:[%s221_s6 + $0x11] ss:$8 sm:$0x3]  ;;  %v270_v13 = vadd.f32 %v1587_v10, %v239_v9 }
  0x16   : > { %v271_v14 = vadd.f32 %v1595_v12, %v1594_v11  ;;  %v1588_v15 = vld [vmem:[%s221_s6 + $0x2] ss:$8 sm:$0x3]  ;;  %v1596_v16 = vld [vmem:[%s221_s6 + $0x12] ss:$8 sm:$0x3] }
  0x17   : > { %v272_v17 = vadd.f32 %v1588_v15, %v270_v13  ;;  %v1589_v19 = vld [vmem:[%s221_s6 + $0x3] ss:$8 sm:$0x3]  ;;  %v1597_v20 = vld [vmem:[%s221_s6 + $0x13] ss:$8 sm:$0x3] }
  0x18   : > { %1648 = vset.pattern.permute.xlu2 %v1702_v2  ;;  %v273_v18 = vadd.f32 %v1596_v16, %v271_v14  ;;  %v1590_v23 = vld [vmem:[%s221_s6 + $0x4] ss:$8 sm:$0x3]  ;;  %v1598_v24 = vld [vmem:[%s221_s6 + $0x14] ss:$8 sm:$0x3] }
  0x19   : > { %340 = vperm.xlu1 %1646, %v233_v4   ;;  %309 = vperm.xlu0 %1645, %v233_v4   ;;  %v274_v21 = vadd.f32 %v1589_v19, %v272_v17  ;;  %v1591_v27 = vld [vmem:[%s221_s6 + $0x5] ss:$8 sm:$0x3]  ;;  %v1599_v28 = vld [vmem:[%s221_s6 + $0x15] ss:$8 sm:$0x3] }
  0x1a   : > { %344 = vperm.xlu2 %1648, %v234_v0   ;;  %v275_v22 = vadd.f32 %v1597_v20, %v273_v18  ;;  %v1592_v31 = vld [vmem:[%s221_s6 + $0x6] ss:$8 sm:$0x3]  ;;  %v1600_v32 = vld [vmem:[%s221_s6 + $0x16] ss:$8 sm:$0x3] }
  0x1b   : > { %v276_v25 = vadd.f32 %v1590_v23, %v274_v21  ;;  %v1593_v35 = vld [vmem:[%s221_s6 + $0x7] ss:$8 sm:$0x3]  ;;  %v1601_v36 = vld [vmem:[%s221_s6 + $0x17] ss:$8 sm:$0x3] }
  0x1c   : > { %v277_v26 = vadd.f32 %v1598_v24, %v275_v22  ;;  %s1620_s14 = sshll.u32 %s3537_s16, 4 }
  0x1d   : > { %v278_v29 = vadd.f32 %v1591_v27, %v276_v25  ;;  %s231_s19 = scalar_lea.vmem %s3279_s4, %s1620_s14 }
  0x1e   : > { %v279_v30 = vadd.f32 %v1599_v28, %v277_v26 }
  0x1f   : > { %v280_v33 = vadd.f32 %v1592_v31, %v278_v29 }
  0x20   : > { %v281_v34 = vadd.f32 %v1600_v32, %v279_v30 }
  0x21   : > { %348 = vperm.xlu1 %1646, %v235_v5   ;;  %319 = vperm.xlu0 %1645, %v235_v5   ;;  %v282_v37 = vadd.f32 %v1593_v35, %v280_v33 }
  0x22   : > { %1649 = vset.pattern.permute.xlu2 %v1704_v6  ;;  %v283_v38 = vadd.f32 %v1601_v36, %v281_v34 }
  0x23   : > { %827 = vperm.xlu2 %1649, %v232_v1   ;;  %v284_v39 = vmul.f32 0.125, %v282_v37 }
  0x24   : > { %v285_v40 = vmul.f32 0.125, %v283_v38 }
  0x25   : > { %v286_v41 = vsub.f32 %v239_v9, %v284_v39  ;;  %v287_v43 = vsub.f32 %v1587_v10, %v284_v39  ;;  %v288_v47 = vsub.f32 %v1588_v15, %v284_v39  ;;  %v291_v13 = vsub.f32 %v1591_v27, %v284_v39 }
  0x26   : > { %v294_v42 = vsub.f32 %v1594_v11, %v285_v40  ;;  %v295_v44 = vsub.f32 %v1595_v12, %v285_v40  ;;  %v296_v48 = vsub.f32 %v1596_v16, %v285_v40  ;;  %v297_v2 = vsub.f32 %v1597_v20, %v285_v40 }
  0x27   : > { %v1770_v49 = vperm.slane %v286_v41, 0  ;;  %v1772_v50 = vperm.slane %v286_v41, 1  ;;  %v1778_v53 = vperm.slane %v287_v43, 0  ;;  %v1780_v54 = vperm.slane %v287_v43, 1 }
  0x28   : > { %v1774_v51 = vperm.slane %v294_v42, 0  ;;  %v1776_v52 = vperm.slane %v294_v42, 1  ;;  %v1782_v55 = vperm.slane %v295_v44, 0  ;;  %v1784_v56 = vperm.slane %v295_v44, 1 }
  0x29   : > { %1650 = vset.pattern.permute.xlu0 %v1704_v6  ;;  %1651 = vset.pattern.permute.xlu1 %v1704_v6  ;;  %v1802_v3 = vperm.slane %v288_v47, 0  ;;  %v298_v6 = vsub.f32 %v1598_v24, %v285_v40  ;;  %v299_v14 = vsub.f32 %v1599_v28, %v285_v40  ;;  %v292_v21 = vsub.f32 %v1592_v31, %v284_v39 }
  0x2a   : > { %831 = vperm.xlu0 %1650, %v233_v4   ;;  %835 = vperm.xlu1 %1651, %v234_v0   ;;  %v300_v22 = vsub.f32 %v1600_v32, %v285_v40  ;;  %v1832_v24 = vperm.slane %v297_v2, 1  ;;  %v293_v29 = vsub.f32 %v1593_v35, %v284_v39  ;;  %v301_v30 = vsub.f32 %v1601_v36, %v285_v40 }
  0x2b   : > { %839 = vperm.xlu2 %1649, %v235_v5   ;;  %v1858_v36 = vperm.slane %v298_v6, 0  ;;  %v1862_v43 = vperm.slane %v291_v13, 0  ;;  %v1864_v44 = vperm.slane %v291_v13, 1 }
  0x2c   : > { %v1890_v13 = vperm.slane %v300_v22, 0 }
  0x32   : > { %1654 = vset.pattern.permute.xlu0 %v1705_v7  ;;  %1652 = vset.pattern.permute.xlu1 %v1705_v7 }
  0x33   : > { %867 = vperm.xlu0 %1654, %v234_v0   ;;  %859 = vperm.xlu1 %1652, %v232_v1  }
  0x34   : > { %1653 = vset.pattern.permute.xlu2 %v1705_v7  ;;  %v1806_v7 = vperm.slane %v296_v48, 0 }
  0x35   : > { %863 = vperm.xlu2 %1653, %v233_v4  }
  0x3b   : > { %871 = vperm.xlu1 %1652, %v235_v5   ;;  %1657 = vset.pattern.permute.xlu0 %v1706_v8 }
  0x3c   : > { %920 = vperm.xlu0 %1657, %v235_v5   ;;  %v290_v5 = vsub.f32 %v1590_v23, %v284_v39  ;;  %v1830_v23 = vperm.slane %v297_v2, 0  ;;  %v1888_v2 = vperm.slane %v292_v21, 1 }
  0x3d   : > { %1655 = vset.pattern.permute.xlu2 %v1706_v8 }
  0x3e   : > { %908 = vperm.xlu2 %1655, %v232_v1   ;;  %v289_v1 = vsub.f32 %v1589_v19, %v284_v39  ;;  %v1854_v41 = vperm.slane %v290_v5, 0  ;;  %v1856_v35 = vperm.slane %v290_v5, 1  ;;  %v1860_v39 = vperm.slane %v298_v6, 1 }
  0x40   : > { %v1818_v15 = vperm.slane %v289_v1, 0  ;;  %v1820_v16 = vperm.slane %v289_v1, 1  ;;  %v1886_v1 = vperm.slane %v292_v21, 0 }
  0x43   : > { %1656 = vset.pattern.permute.xlu1 %v1706_v8  ;;  %v1808_v8 = vperm.slane %v296_v48, 1 }
  0x44   : > { %912 = vperm.xlu1 %1656, %v233_v4   ;;  %v1804_v4 = vperm.slane %v288_v47, 1 }
  0x46   : > { %916 = vperm.xlu2 %1655, %v234_v0  }
  0x83   : > { %v1766_v45 = vpop.permute.xlu1 %336  ;;  %v1768_v46 = vpop.permute.xlu0 %304 }
  0x84   : > { %v327_v57 = vmul.f32 %v1770_v49, %v1768_v46  ;;  %v328_v58 = vmul.f32 %v1772_v50, %v1768_v46  ;;  %v356_v59 = vmul.f32 %v1774_v51, %v1766_v45  ;;  %v357_v60 = vmul.f32 %v1776_v52, %v1766_v45 }
  0x85   : > { %v385_v61 = vmul.f32 %v1778_v53, %v1768_v46  ;;  %v386_v62 = vmul.f32 %v1780_v54, %v1768_v46  ;;  %v398_v63 = vmul.f32 %v1782_v55, %v1766_v45  ;;  %v399_v0 = vmul.f32 %v1784_v56, %v1766_v45 }
  0x86   : > { %v1810_v9 = vadd.f32 %v356_v59, %v327_v57  ;;  %v1812_v10 = vadd.f32 %v357_v60, %v328_v58  ;;  %v435_v17 = vmul.f32 %v1802_v3, %v1768_v46  ;;  %v436_v18 = vmul.f32 %v1804_v4, %v1768_v46 }
  0x87   : > { %v1814_v11 = vadd.f32 %v398_v63, %v385_v61  ;;  %v1816_v12 = vadd.f32 %v399_v0, %v386_v62  ;;  %v448_v19 = vmul.f32 %v1806_v7, %v1766_v45  ;;  %v449_v20 = vmul.f32 %v1808_v8, %v1766_v45 }
  0x88   : > { %3340 = vst [vmem:[#allocation5_spill] sm:$0xff] %v1810_v9  ;;  %v372_v25 = vmul.f32 %v1810_v9, %v1810_v9  ;;  %v373_v26 = vmul.f32 %v1812_v10, %v1812_v10  ;;  %v485_v31 = vmul.f32 %v1818_v15, %v1768_v46  ;;  %v486_v32 = vmul.f32 %v1820_v16, %v1768_v46 }
  0x89   : > { %3341 = vst [vmem:[#allocation6_spill] sm:$0xff] %v1812_v10  ;;  %v414_v27 = vmul.f32 %v1814_v11, %v1814_v11  ;;  %v415_v28 = vmul.f32 %v1816_v12, %v1816_v12  ;;  %v1846_v33 = vadd.f32 %v448_v19, %v435_v17  ;;  %v1848_v34 = vadd.f32 %v449_v20, %v436_v18 }
  0x8a   : > { %3342 = vst [vmem:[#allocation7_spill] sm:$0xff] %v1814_v11  ;;  %v498_v37 = vmul.f32 %v1830_v23, %v1766_v45  ;;  %v499_v38 = vmul.f32 %v1832_v24, %v1766_v45  ;;  %v535_v47 = vmul.f32 %v1854_v41, %v1768_v46  ;;  %v536_v48 = vmul.f32 %v1856_v35, %v1768_v46 }
  0x8b   : > { %3343 = vst [vmem:[#allocation8_spill] sm:$0xff] %v1816_v12  ;;  %v422_v40 = vadd.f32 %v414_v27, %v372_v25  ;;  %v423_v42 = vadd.f32 %v415_v28, %v373_v26  ;;  %v548_v57 = vmul.f32 %v1858_v36, %v1766_v45  ;;  %v549_v58 = vmul.f32 %v1860_v39, %v1766_v45  ;;  %v1910_v27 = vpop.permute.xlu0 %309 }
  0x8c   : > { %3344 = vst [vmem:[#allocation9_spill] sm:$0xff] %v1846_v33  ;;  %v464_v59 = vmul.f32 %v1846_v33, %v1846_v33  ;;  %v465_v60 = vmul.f32 %v1848_v34, %v1848_v34  ;;  %v1878_v61 = vadd.f32 %v498_v37, %v485_v31  ;;  %v1880_v62 = vadd.f32 %v499_v38, %v486_v32  ;;  %v1920_v38 = vpop.permute.xlu1 %340 }
  0x8d   : > { %3345 = vst [vmem:[#allocation10_spill] sm:$0xff] %v1848_v34  ;;  %v1882_v63 = vperm.slane %v299_v14, 0  ;;  %v1884_v0 = vperm.slane %v299_v14, 1  ;;  %v1892_v17 = vperm.slane %v300_v22, 1  ;;  %v1894_v18 = vadd.f32 %v548_v57, %v535_v47 }
  0x8e   : > { %3346 = vst [vmem:[#allocation11_spill] sm:$0xff] %v1878_v61  ;;  %v472_v5 = vadd.f32 %v464_v59, %v422_v40  ;;  %v473_v6 = vadd.f32 %v465_v60, %v423_v42  ;;  %v1896_v19 = vadd.f32 %v549_v58, %v536_v48  ;;  %v585_v20 = vmul.f32 %v1862_v43, %v1768_v46 }
  0x8f   : > { %3347 = vst [vmem:[#allocation12_spill] sm:$0xff] %v1880_v62  ;;  %v598_v14 = vmul.f32 %v1882_v63, %v1766_v45  ;;  %v514_v21 = vmul.f32 %v1878_v61, %v1878_v61  ;;  %v515_v25 = vmul.f32 %v1880_v62, %v1880_v62  ;;  %v1906_v26 = vperm.slane %v293_v29, 0 }
  0x90   : > { %3348 = vst [vmem:[#allocation13_spill] sm:$0xff] %v1894_v18  ;;  %v1908_v22 = vperm.slane %v293_v29, 1  ;;  %v586_v28 = vmul.f32 %v1864_v44, %v1768_v46  ;;  %v599_v31 = vmul.f32 %v1884_v0, %v1766_v45  ;;  %v1916_v32 = vperm.slane %v301_v30, 0 }
  0x91   : > { %3349 = vst [vmem:[#allocation14_spill] sm:$0xff] %v1896_v19  ;;  %v1918_v37 = vperm.slane %v301_v30, 1  ;;  %v522_v40 = vadd.f32 %v514_v21, %v472_v5  ;;  %v523_v42 = vadd.f32 %v515_v25, %v473_v6  ;;  %v635_v29 = vmul.f32 %v1886_v1, %v1768_v46 }
  0x92   : > { %v636_v47 = vmul.f32 %v1888_v2, %v1768_v46  ;;  %v564_v48 = vmul.f32 %v1894_v18, %v1894_v18  ;;  %v565_v57 = vmul.f32 %v1896_v19, %v1896_v19  ;;  %v1930_v58 = vadd.f32 %v598_v14, %v585_v20 }
  0x93   : > { %v329_v30 = vmul.f32 %v1770_v49, %v1910_v27  ;;  %v330_v59 = vmul.f32 %v1772_v50, %v1910_v27  ;;  %v358_v60 = vmul.f32 %v1774_v51, %v1920_v38  ;;  %v359_v5 = vmul.f32 %v1776_v52, %v1920_v38 }
  0x94   : > { %3350 = vst [vmem:[#allocation15_spill] sm:$0xff] %v1930_v58  ;;  %v387_v6 = vmul.f32 %v1778_v53, %v1910_v27  ;;  %v388_v21 = vmul.f32 %v1780_v54, %v1910_v27  ;;  %v400_v20 = vmul.f32 %v1782_v55, %v1920_v38  ;;  %v401_v14 = vmul.f32 %v1784_v56, %v1920_v38 }
  0x95   : > { %v437_v25 = vmul.f32 %v1802_v3, %v1910_v27  ;;  %v1950_v19 = vadd.f32 %v358_v60, %v329_v30  ;;  %v1952_v18 = vadd.f32 %v359_v5, %v330_v59  ;;  %v438_v62 = vmul.f32 %v1804_v4, %v1910_v27 }
  0x96   : > { %v450_v34 = vmul.f32 %v1806_v7, %v1920_v38  ;;  %v1958_v12 = vadd.f32 %v599_v31, %v586_v28  ;;  %v1960_v10 = vadd.f32 %v400_v20, %v387_v6  ;;  %v1962_v61 = vadd.f32 %v401_v14, %v388_v21 }
  0x97   : > { %3351 = vst [vmem:[#allocation16_spill] sm:$0xff] %v1950_v19  ;;  %v451_v33 = vmul.f32 %v1808_v8, %v1920_v38  ;;  %v648_v30 = vmul.f32 %v1890_v13, %v1766_v45  ;;  %v649_v59 = vmul.f32 %v1892_v17, %v1766_v45  ;;  %v374_v60 = vmul.f32 %v1950_v19, %v1950_v19 }
  0x98   : > { %3352 = vst [vmem:[#allocation17_spill] sm:$0xff] %v1952_v18  ;;  %v375_v28 = vmul.f32 %v1952_v18, %v1952_v18  ;;  %v416_v31 = vmul.f32 %v1960_v10, %v1960_v10  ;;  %v417_v5 = vmul.f32 %v1962_v61, %v1962_v61  ;;  %v1978_v6 = vadd.f32 %v450_v34, %v437_v25 }
  0x99   : > { %3353 = vst [vmem:[#allocation18_spill] sm:$0xff] %v1958_v12  ;;  %v487_v21 = vmul.f32 %v1818_v15, %v1910_v27  ;;  %v572_v20 = vadd.f32 %v564_v48, %v522_v40  ;;  %v573_v14 = vadd.f32 %v565_v57, %v523_v42  ;;  %v1982_v11 = vadd.f32 %v451_v33, %v438_v62 }
  0x9a   : > { %3354 = vst [vmem:[#allocation19_spill] sm:$0xff] %v1960_v10  ;;  %v488_v9 = vmul.f32 %v1820_v16, %v1910_v27  ;;  %v614_v18 = vmul.f32 %v1930_v58, %v1930_v58  ;;  %v685_v10 = vmul.f32 %v1906_v26, %v1768_v46  ;;  %v686_v34 = vmul.f32 %v1908_v22, %v1768_v46 }
  0x9b   : > { %3355 = vst [vmem:[#allocation20_spill] sm:$0xff] %v1962_v61  ;;  %v500_v25 = vmul.f32 %v1830_v23, %v1920_v38  ;;  %v615_v40 = vmul.f32 %v1958_v12, %v1958_v12  ;;  %v424_v33 = vadd.f32 %v416_v31, %v374_v60  ;;  %v425_v62 = vadd.f32 %v417_v5, %v375_v28 }
  0x9c   : > { %3356 = vst [vmem:[#allocation21_spill] sm:$0xff] %v1978_v6  ;;  %v501_v42 = vmul.f32 %v1832_v24, %v1920_v38  ;;  %v1998_v48 = vadd.f32 %v648_v30, %v635_v29  ;;  %v466_v57 = vmul.f32 %v1978_v6, %v1978_v6  ;;  %v537_v46 = vmul.f32 %v1854_v41, %v1910_v27 }
  0x9d   : > { %3357 = vst [vmem:[#allocation22_spill] sm:$0xff] %v1982_v11  ;;  %v2002_v58 = vadd.f32 %v500_v25, %v487_v21  ;;  %v467_v61 = vmul.f32 %v1982_v11, %v1982_v11  ;;  %v538_v60 = vmul.f32 %v1856_v35, %v1910_v27  ;;  %v550_v29 = vmul.f32 %v1858_v36, %v1920_v38 }
  0x9e   : > { %3358 = vst [vmem:[#allocation23_spill] sm:$0xff] %v1998_v48  ;;  %v2008_v19 = vadd.f32 %v501_v42, %v488_v9  ;;  %v2014_v30 = vadd.f32 %v649_v59, %v636_v47  ;;  %v698_v28 = vmul.f32 %v1916_v32, %v1766_v45  ;;  %v699_v31 = vmul.f32 %v1918_v37, %v1766_v45 }
  0x9f   : > { %3359 = vst [vmem:[#allocation24_spill] sm:$0xff] %v2002_v58  ;;  %v551_v5 = vmul.f32 %v1860_v39, %v1920_v38  ;;  %v622_v21 = vadd.f32 %v614_v18, %v572_v20  ;;  %v623_v9 = vadd.f32 %v615_v40, %v573_v14  ;;  %v474_v25 = vadd.f32 %v466_v57, %v424_v33 }
  0xa0   : > { %3360 = vst [vmem:[#allocation25_spill] sm:$0xff] %v2008_v19  ;;  %v475_v42 = vadd.f32 %v467_v61, %v425_v62  ;;  %v516_v12 = vmul.f32 %v2002_v58, %v2002_v58  ;;  %v517_v47 = vmul.f32 %v2008_v19, %v2008_v19  ;;  %v2026_v59 = vadd.f32 %v550_v29, %v537_v46  ;;  %v2046_v46 = vpop.permute.xlu2 %314 }
  0xa1   : > { %v587_v11 = vmul.f32 %v1862_v43, %v1910_v27  ;;  %v2030_v6 = vadd.f32 %v551_v5, %v538_v60  ;;  %v588_v45 = vmul.f32 %v1864_v44, %v1910_v27  ;;  %v600_v18 = vmul.f32 %v1882_v63, %v1920_v38 }
  0xa2   : > { %3361 = vst [vmem:[#allocation26_spill] sm:$0xff] %v2026_v59  ;;  %v601_v61 = vmul.f32 %v1884_v0, %v1920_v38  ;;  %v664_v20 = vmul.f32 %v1998_v48, %v1998_v48  ;;  %v665_v14 = vmul.f32 %v2014_v30, %v2014_v30  ;;  %v2042_v40 = vadd.f32 %v698_v28, %v685_v10 }
  0xa3   : > { %3362 = vst [vmem:[#allocation27_spill] sm:$0xff] %v2030_v6  ;;  %v2044_v33 = vadd.f32 %v699_v31, %v686_v34  ;;  %v524_v62 = vadd.f32 %v516_v12, %v474_v25  ;;  %v525_v57 = vadd.f32 %v517_v47, %v475_v42  ;;  %v566_v5 = vmul.f32 %v2026_v59, %v2026_v59 }
  0xa4   : > { %3363 = vst [vmem:[#allocation28_spill] sm:$0xff] %v2042_v40  ;;  %v672_v60 = vadd.f32 %v664_v20, %v622_v21  ;;  %v673_v29 = vadd.f32 %v665_v14, %v623_v9  ;;  %v567_v19 = vmul.f32 %v2030_v6, %v2030_v6  ;;  %v2052_v48 = vadd.f32 %v600_v18, %v587_v11 }
  0xa5   : > { %3364 = vst [vmem:[#allocation29_spill] sm:$0xff] %v2044_v33  ;;  %v2054_v58 = vadd.f32 %v601_v61, %v588_v45  ;;  %v714_v10 = vmul.f32 %v2042_v40, %v2042_v40  ;;  %v715_v12 = vmul.f32 %v2044_v33, %v2044_v33  ;;  %v574_v34 = vadd.f32 %v566_v5, %v524_v62 }
  0xa6   : > { %3365 = vst [vmem:[#allocation30_spill] sm:$0xff] %v2052_v48  ;;  %v575_v28 = vadd.f32 %v567_v19, %v525_v57  ;;  %v637_v31 = vmul.f32 %v1886_v1, %v1910_v27  ;;  %v638_v21 = vmul.f32 %v1888_v2, %v1910_v27  ;;  %v616_v11 = vmul.f32 %v2052_v48, %v2052_v48 }
  0xa7   : > { %3366 = vst [vmem:[#allocation31_spill] sm:$0xff] %v2054_v58  ;;  %v722_v9 = vadd.f32 %v714_v10, %v672_v60  ;;  %v723_v25 = vadd.f32 %v715_v12, %v673_v29  ;;  %v617_v42 = vmul.f32 %v2054_v58, %v2054_v58  ;;  %v650_v47 = vmul.f32 %v1890_v13, %v1920_v38 }
  0xa8   : > { %v651_v19 = vmul.f32 %v1892_v17, %v1920_v38  ;;  %v687_v45 = vmul.f32 %v1906_v26, %v1910_v27  ;;  %v688_v18 = vmul.f32 %v1908_v22, %v1910_v27  ;;  %v700_v61 = vmul.f32 %v1916_v32, %v1920_v38  ;;  %v2092_v48 = vpop.permute.xlu2 %344 }
  0xa9   : > { %v701_v20 = vmul.f32 %v1918_v37, %v1920_v38  ;;  %v624_v14 = vadd.f32 %v616_v11, %v574_v34  ;;  %v625_v62 = vadd.f32 %v617_v42, %v575_v28  ;;  %v2080_v57 = vadd.f32 %v650_v47, %v637_v31 }
  0xaa   : > { %v2082_v60 = vadd.f32 %v651_v19, %v638_v21  ;;  %v730_v29 = vmul.f32 0.125, %v722_v9  ;;  %v731_v5 = vmul.f32 0.125, %v723_v25  ;;  %v2084_v10 = vadd.f32 %v700_v61, %v687_v45 }
  0xab   : > { %3367 = vst [vmem:[#allocation32_spill] sm:$0xff] %v2080_v57  ;;  %v2086_v12 = vadd.f32 %v701_v20, %v688_v18  ;;  %v666_v27 = vmul.f32 %v2080_v57, %v2080_v57  ;;  %v331_v25 = vmul.f32 %v1770_v49, %v2046_v46  ;;  %v332_v11 = vmul.f32 %v1772_v50, %v2046_v46 }
  0xac   : > { %3368 = vst [vmem:[#allocation33_spill] sm:$0xff] %v2082_v60  ;;  %v667_v58 = vmul.f32 %v2082_v60, %v2082_v60  ;;  %v716_v28 = vmul.f32 %v2084_v10, %v2084_v10  ;;  %v2098_v21 = vadd.f32 1e-05, %v730_v29  ;;  %v2100_v9 = vadd.f32 1e-05, %v731_v5 }
  0xad   : > { %3369 = vst [vmem:[#allocation34_spill] sm:$0xff] %v2084_v10  ;;  %v674_v38 = vadd.f32 %v666_v27, %v624_v14  ;;  %v717_v31 = vmul.f32 %v2086_v12, %v2086_v12  ;;  %v361_v19 = vmul.f32 %v1776_v52, %v2092_v48  ;;  %v389_v45 = vmul.f32 %v1778_v53, %v2046_v46  ;;  %v2170_v10 = vpop.permute.xlu1 %348 }
  0xae   : > { %3370 = vst [vmem:[#allocation35_spill] sm:$0xff] %v2086_v12  ;;  %v675_v34 = vadd.f32 %v667_v58, %v625_v62  ;;  %v360_v58 = vmul.f32 %v1774_v51, %v2092_v48  ;;  %v390_v18 = vmul.f32 %v1780_v54, %v2046_v46  ;;  %v402_v61 = vmul.f32 %v1782_v55, %v2092_v48 }
  0xaf   : > { %v724_v42 = vadd.f32 %v716_v28, %v674_v38  ;;  %v403_v20 = vmul.f32 %v1784_v56, %v2092_v48  ;;  %1658 = vrsqrt.f32 %v2098_v21  ;;  %v2125_v38 = vadd.f32 %v361_v19, %v332_v11 }
  0xb0   : > { %v725_v47 = vadd.f32 %v717_v31, %v675_v34  ;;  %v2123_v27 = vadd.f32 %v360_v58, %v331_v25  ;;  %1660 = vrsqrt.f32 %v2100_v9  ;;  %v2128_v34 = vadd.f32 %v402_v61, %v389_v45 }
  0xb1   : > { %v732_v14 = vmul.f32 0.125, %v724_v42  ;;  %3372 = vst [vmem:[#allocation37_spill] sm:$0xff] %v2125_v38  ;;  %v2130_v28 = vadd.f32 %v403_v20, %v390_v18  ;;  %v439_v31 = vmul.f32 %v1802_v3, %v2046_v46  ;;  %v440_v42 = vmul.f32 %v1804_v4, %v2046_v46 }
  0xb2   : > { %v733_v62 = vmul.f32 0.125, %v725_v47  ;;  %3371 = vst [vmem:[#allocation36_spill] sm:$0xff] %v2123_v27  ;;  %v452_v47 = vmul.f32 %v1806_v7, %v2092_v48  ;;  %v453_v25 = vmul.f32 %v1808_v8, %v2092_v48  ;;  %v376_v11 = vmul.f32 %v2123_v27, %v2123_v27 }
  0xb3   : > { %v2119_v29 = vadd.f32 1e-05, %v732_v14  ;;  %3373 = vst [vmem:[#allocation38_spill] sm:$0xff] %v2128_v34  ;;  %v377_v58 = vmul.f32 %v2125_v38, %v2125_v38  ;;  %v418_v45 = vmul.f32 %v2128_v34, %v2128_v34  ;;  %v419_v18 = vmul.f32 %v2130_v28, %v2130_v28 }
  0xb4   : > { %v2121_v5 = vadd.f32 1e-05, %v733_v62  ;;  %3374 = vst [vmem:[#allocation39_spill] sm:$0xff] %v2130_v28  ;;  %v489_v61 = vmul.f32 %v1818_v15, %v2046_v46  ;;  %v490_v20 = vmul.f32 %v1820_v16, %v2046_v46  ;;  %v2156_v14 = vadd.f32 %v452_v47, %v439_v31 }
  0xb5   : > { %1662 = vrsqrt.f32 %v2119_v29  ;;  %v2146_v19 = vpop.eup %1658  ;;  %v2158_v62 = vadd.f32 %v453_v25, %v440_v42  ;;  %v502_v38 = vmul.f32 %v1830_v23, %v2092_v48  ;;  %v503_v27 = vmul.f32 %v1832_v24, %v2092_v48 }
  0xb6   : > { %1664 = vrsqrt.f32 %v2121_v5  ;;  %3375 = vst [vmem:[#allocation40_spill] sm:$0xff] %v2156_v14  ;;  %v2164_v34 = vpop.eup %1660  ;;  %v747_v28 = vmul.f32 %v2146_v19, %v2098_v21  ;;  %v426_v60 = vadd.f32 %v418_v45, %v376_v11  ;;  %v427_v31 = vadd.f32 %v419_v18, %v377_v58 }
  0xb7   : > { %3376 = vst [vmem:[#allocation41_spill] sm:$0xff] %v2158_v62  ;;  %v468_v42 = vmul.f32 %v2156_v14, %v2156_v14  ;;  %v469_v25 = vmul.f32 %v2158_v62, %v2158_v62  ;;  %v2178_v57 = vadd.f32 %v502_v38, %v489_v61  ;;  %v2180_v6 = vadd.f32 %v503_v27, %v490_v20 }
  0xb8   : > { %v539_v59 = vmul.f32 %v1854_v41, %v2046_v46  ;;  %v540_v33 = vmul.f32 %v1856_v35, %v2046_v46  ;;  %v552_v11 = vmul.f32 %v1858_v36, %v2092_v48  ;;  %v553_v58 = vmul.f32 %v1860_v39, %v2092_v48 }
  0xb9   : > { %3377 = vst [vmem:[#allocation42_spill] sm:$0xff] %v2178_v57  ;;  %v2192_v45 = vmul.f32 %v1774_v51, %v2170_v10  ;;  %v2196_v27 = vmul.f32 %v1776_v52, %v2170_v10  ;;  %v748_v18 = vmul.f32 %v2146_v19, %v747_v28  ;;  %v757_v61 = vmul.f32 %v2164_v34, %v2100_v9 }
  0xba   : > { %3378 = vst [vmem:[#allocation43_spill] sm:$0xff] %v2180_v6  ;;  %v2205_v20 = vmul.f32 %v1782_v55, %v2170_v10  ;;  %v476_v62 = vadd.f32 %v468_v42, %v426_v60  ;;  %v477_v14 = vadd.f32 %v469_v25, %v427_v31  ;;  %v518_v52 = vmul.f32 %v2178_v57, %v2178_v57 }
  0xbb   : > { %v2166_v12 = vpop.eup %1662  ;;  %3379 = vst [vmem:[#allocation44_spill] sm:$0xff] %v2192_v45  ;;  %v2213_v45 = vadd.f32 %v552_v11, %v539_v59  ;;  %v2215_v28 = vadd.f32 %v553_v58, %v540_v33  ;;  %v589_v40 = vmul.f32 %v1862_v43, %v2046_v46  ;;  %v602_v55 = vmul.f32 %v1882_v63, %v2092_v48 }
  0xbc   : > { %v2172_v47 = vpop.eup %1664  ;;  %3380 = vst [vmem:[#allocation45_spill] sm:$0xff] %v2196_v27  ;;  %v767_v38 = vmul.f32 %v2166_v12, %v2119_v29  ;;  %v519_v27 = vmul.f32 %v2180_v6, %v2180_v6  ;;  %v2223_v60 = vmul.f32 %v1784_v56, %v2170_v10  ;;  %v590_v42 = vmul.f32 %v1864_v44, %v2046_v46 }
  0xbd   : > { %v777_v51 = vmul.f32 %v2172_v47, %v2121_v5  ;;  %3381 = vst [vmem:[#allocation46_spill] sm:$0xff] %v2213_v45  ;;  %v603_v59 = vmul.f32 %v1884_v0, %v2092_v48  ;;  %v758_v33 = vmul.f32 %v2164_v34, %v757_v61  ;;  %v2233_v25 = vmul.f32 %v1806_v7, %v2170_v10 }
  0xbe   : > { %3382 = vst [vmem:[#allocation47_spill] sm:$0xff] %v2215_v28  ;;  %v768_v31 = vmul.f32 %v2166_v12, %v767_v38  ;;  %v2237_v11 = vmul.f32 %v1808_v8, %v2170_v10  ;;  %v749_v58 = vmul.f32 0.5, %v748_v18  ;;  %v526_v38 = vadd.f32 %v518_v52, %v476_v62  ;;  %v2268_v52 = vpop.permute.xlu2 %827 }
  0xbf   : > { %3383 = vst [vmem:[#allocation48_spill] sm:$0xff] %v2223_v60  ;;  %v778_v56 = vmul.f32 %v2172_v47, %v777_v51  ;;  %v527_v6 = vadd.f32 %v519_v27, %v477_v14  ;;  %v639_v57 = vmul.f32 %v1886_v1, %v2046_v46  ;;  %v568_v60 = vmul.f32 %v2213_v45, %v2213_v45 }
  0xc0   : > { %3384 = vst [vmem:[#allocation49_spill] sm:$0xff] %v2233_v25  ;;  %v569_v61 = vmul.f32 %v2215_v28, %v2215_v28  ;;  %v2246_v7 = vadd.f32 %v602_v55, %v589_v40  ;;  %v652_v8 = vmul.f32 %v1890_v13, %v2092_v48  ;;  %v2250_v25 = vadd.f32 %v603_v59, %v590_v42 }
  0xc1   : > { %3385 = vst [vmem:[#allocation50_spill] sm:$0xff] %v2237_v11  ;;  %v769_v11 = vmul.f32 0.5, %v768_v31  ;;  %v640_v14 = vmul.f32 %v1888_v2, %v2046_v46  ;;  %v653_v62 = vmul.f32 %v1892_v17, %v2092_v48  ;;  %v2258_v27 = vmul.f32 %v1830_v23, %v2170_v10 }
  0xc2   : > { %3386 = vst [vmem:[#allocation51_spill] sm:$0xff] %v2246_v7  ;;  %v2262_v40 = vmul.f32 %v1832_v24, %v2170_v10  ;;  %v2266_v18 = vmul.f32 %v1858_v36, %v2170_v10  ;;  %v779_v51 = vmul.f32 0.5, %v778_v56  ;;  %v750_v55 = vsub.f32 1.5, %v749_v58 }
  0xc3   : > { %3387 = vst [vmem:[#allocation52_spill] sm:$0xff] %v2250_v25  ;;  %v759_v31 = vmul.f32 0.5, %v758_v33  ;;  %v2272_v42 = vmul.f32 %v1860_v39, %v2170_v10  ;;  %v2276_v23 = vmul.f32 %v1882_v63, %v2170_v10  ;;  %v576_v59 = vadd.f32 %v568_v60, %v526_v38  ;;  %v320_v38 = vpop.permute.xlu0 %319 }
  0xc4   : > { %v577_v24 = vadd.f32 %v569_v61, %v527_v6  ;;  %v618_v28 = vmul.f32 %v2246_v7, %v2246_v7  ;;  %v2280_v36 = vadd.f32 %v652_v8, %v639_v57  ;;  %v770_v56 = vsub.f32 1.5, %v769_v11 }
  0xc5   : > { %3388 = vst [vmem:[#allocation53_spill] sm:$0xff] %v2276_v23  ;;  %v619_v58 = vmul.f32 %v2250_v25, %v2250_v25  ;;  %v2284_v33 = vadd.f32 %v653_v62, %v640_v14  ;;  %v689_v39 = vmul.f32 %v1906_v26, %v2046_v46  ;;  %v780_v45 = vsub.f32 1.5, %v779_v51  ;;  %v3449_v25 = vld [vmem:[#allocation35_spill] sm:$0xff] }
  0xc6   : > { %3389 = vst [vmem:[#allocation54_spill] sm:$0xff] %v2280_v36  ;;  %v690_v63 = vmul.f32 %v1908_v22, %v2046_v46  ;;  %v702_v6 = vmul.f32 %v1916_v32, %v2092_v48  ;;  %v703_v57 = vmul.f32 %v1918_v37, %v2092_v48  ;;  %vm752_vm0 = vweird.f32 %v2098_v21 }
  0xc7   : > { %3390 = vst [vmem:[#allocation55_spill] sm:$0xff] %v2284_v33  ;;  %vm753_vm1 = vweird.f32 %v2146_v19  ;;  %v2298_v60 = vmul.f32 %v1884_v0, %v2170_v10  ;;  %v2302_v11 = vmul.f32 %v1890_v13, %v2170_v10  ;;  %v751_v46 = vmul.f32 %v2146_v19, %v750_v55 }
  0xc8   : > { %v760_v61 = vsub.f32 1.5, %v759_v31  ;;  %vm773_vm2 = vweird.f32 %v2166_v12  ;;  %vm783_vm3 = vweird.f32 %v2172_v47  ;;  %v771_v48 = vmul.f32 %v2166_v12, %v770_v56  ;;  %vm2321_vm4 = vmor %vm752_vm0, %vm753_vm1  ;;  %v3414_v31 = vld [vmem:[#allocation19_spill] sm:$0xff] }
  0xc9   : > { %3391 = vst [vmem:[#allocation56_spill] sm:$0xff] %v2298_v60  ;;  %v626_v8 = vadd.f32 %v618_v28, %v576_v59  ;;  %v627_v14 = vadd.f32 %v619_v58, %v577_v24  ;;  %v668_v0 = vmul.f32 %v2280_v36, %v2280_v36  ;;  %v781_v62 = vmul.f32 %v2172_v47, %v780_v45  ;;  %v3437_v60 = vld [vmem:[#allocation29_spill] sm:$0xff] }
  0xca   : > { %3392 = vst [vmem:[#allocation57_spill] sm:$0xff] %v2302_v11  ;;  %v669_v13 = vmul.f32 %v2284_v33, %v2284_v33  ;;  %v2313_v51 = vadd.f32 %v702_v6, %v689_v39  ;;  %v2315_v55 = vadd.f32 %v703_v57, %v690_v63  ;;  %v2327_v28 = vmul.f32 %v1892_v17, %v2170_v10 }
  0xcb   : > { %v2331_v45 = vmul.f32 %v1916_v32, %v2170_v10  ;;  %v2335_v59 = vmul.f32 %v1918_v37, %v2170_v10  ;;  %vm772_vm5 = vweird.f32 %v2119_v29  ;;  %v761_v21 = vmul.f32 %v2164_v34, %v760_v61  ;;  %v2354_v37 = vpop.permute.xlu2 %839  ;;  %v832_v6 = vpop.permute.xlu0 %831 }
  0xcc   : > { %3393 = vst [vmem:[#allocation58_spill] sm:$0xff] %v2313_v51  ;;  %vm763_vm6 = vweird.f32 %v2164_v34  ;;  %v2341_v24 = vmul.f32 %v1770_v49, %v320_v38  ;;  %vm2345_vm7 = vmor %vm772_vm5, %vm773_vm2  ;;  %vm782_vm8 = vweird.f32 %v2121_v5  ;;  %v755_v32 = vsel %vm2321_vm4, %v2146_v19, %v751_v46 }
  0xcd   : > { %3394 = vst [vmem:[#allocation59_spill] sm:$0xff] %v2315_v55  ;;  %vm762_vm9 = vweird.f32 %v2100_v9  ;;  %v775_v49 = vsel %vm2345_vm7, %v2166_v12, %v771_v48  ;;  %vm2363_vm10 = vmor %vm782_vm8, %vm783_vm3  ;;  %v676_v29 = vadd.f32 %v668_v0, %v626_v8  ;;  %v677_v9 = vadd.f32 %v669_v13, %v627_v14 }
  0xce   : > { %3397 = vst [vmem:[#allocation60_spill] sm:$0xff] %v2327_v28  ;;  %v785_v5 = vsel %vm2363_vm10, %v2172_v47, %v781_v62  ;;  %v718_v19 = vmul.f32 %v2313_v51, %v2313_v51  ;;  %v719_v56 = vmul.f32 %v2315_v55, %v2315_v55  ;;  %vm2376_vm11 = vmor %vm762_vm9, %vm763_vm6  ;;  %v2381_v58 = vmul.f32 %v1772_v50, %v320_v38  ;;  %v3448_v51 = vld [vmem:[#allocation34_spill] sm:$0xff] }
  0xcf   : > { %3398 = vst [vmem:[#allocation61_spill] sm:$0xff] %v2331_v45  ;;  %v2384_v39 = vmul.f32 %v1778_v53, %v320_v38  ;;  %v2387_v47 = vmul.f32 %v1780_v54, %v320_v38  ;;  %v2390_v63 = vmul.f32 %v1802_v3, %v320_v38  ;;  %v765_v57 = vsel %vm2376_vm11, %v2164_v34, %v761_v21 }
  0xd0   : > { %3399 = vst [vmem:[#allocation62_spill] sm:$0xff] %v2335_v59  ;;  %v2396_v46 = vmul.f32 %v1804_v4, %v320_v38  ;;  %v2399_v50 = vmul.f32 %v1818_v15, %v320_v38  ;;  %v2401_v61 = vmul.f32 %v832_v6, %v775_v49  ;;  %v842_v53 = vmul.f32 %v2268_v52, %v755_v32  ;;  %v3417_v32 = vld [vmem:[#allocation17_spill] sm:$0xff] }
  0xd1   : > { %3402 = vst [vmem:[#allocation63_spill] sm:$0xff] %v2354_v37  ;;  %v2405_v54 = vmul.f32 %v1820_v16, %v320_v38  ;;  %v2408_v3 = vmul.f32 %v1854_v41, %v320_v38  ;;  %v2410_v48 = vmul.f32 %v832_v6, %v785_v5  ;;  %v2413_v34 = vmul.f32 %v1856_v35, %v320_v38  ;;  %v3418_v49 = vld [vmem:[#allocation9_spill] sm:$0xff] }
  0xd2   : > { %v2416_v4 = vmul.f32 %v1862_v43, %v320_v38  ;;  %v726_v15 = vadd.f32 %v718_v19, %v676_v29  ;;  %v727_v8 = vadd.f32 %v719_v56, %v677_v9  ;;  %v843_v14 = vmul.f32 %v2268_v52, %v765_v57  ;;  %v3413_v43 = vld [vmem:[#allocation16_spill] sm:$0xff]  ;;  %v3420_v9 = vld [vmem:[#allocation6_spill] sm:$0xff] }
  0xd3   : > { %v2420_v0 = vmul.f32 %v1864_v44, %v320_v38  ;;  %v2423_v16 = vmul.f32 %v1886_v1, %v320_v38  ;;  %v2426_v41 = vmul.f32 %v1888_v2, %v320_v38  ;;  %v2429_v62 = vmul.f32 %v1906_v26, %v320_v38  ;;  %v3415_v44 = vld [vmem:[#allocation5_spill] sm:$0xff]  ;;  %v3416_v1 = vld [vmem:[#allocation7_spill] sm:$0xff]  ;;  %v3421_v56 = vld [vmem:[#allocation8_spill] sm:$0xff]  ;;  %v2461_v6 = vpop.permute.xlu2 %863 }
  0xd4   : > { %3407 = vst [vmem:[#allocation64_spill] sm:$0xff] %v2416_v4  ;;  %v2432_v35 = vmul.f32 %v1908_v22, %v320_v38  ;;  %v852_v13 = vmul.f32 %v2401_v61, %v3413_v43  ;;  %v954_v52 = vmul.f32 %v2401_v61, %v3414_v31  ;;  %v2439_v21 = vmul.f32 %v842_v53, %v3415_v44  ;;  %v3419_v38 = vld [vmem:[#allocation11_spill] sm:$0xff]  ;;  %v3422_v57 = vld [vmem:[#allocation20_spill] sm:$0xff]  ;;  %v3423_v31 = vld [vmem:[#allocation21_spill] sm:$0xff] }
  0xd5   : > { %3408 = vst [vmem:[#allocation65_spill] sm:$0xff] %v2420_v0  ;;  %v2442_v17 = vmul.f32 %v842_v53, %v3416_v1  ;;  %v2445_v2 = vstv %s2356_s7  ;;  %v853_v26 = vmul.f32 %v2410_v48, %v3417_v32  ;;  %v2450_v22 = vmul.f32 %v842_v53, %v3418_v49  ;;  %v3424_v49 = vld [vmem:[#allocation10_spill] sm:$0xff] }
  0xd6   : > { %3409 = vst [vmem:[#allocation66_spill] sm:$0xff] %v2423_v16  ;;  %v2453_v10 = vmul.f32 %v842_v53, %v3419_v38  ;;  %v734_v29 = vmul.f32 0.125, %v726_v15  ;;  %v735_v5 = vmul.f32 0.125, %v727_v8  ;;  %v2456_v19 = vmul.f32 %v843_v14, %v3420_v9  ;;  %v3425_v9 = vld [vmem:[#allocation12_spill] sm:$0xff] }
  0xd7   : > { %3410 = vst [vmem:[#allocation67_spill] sm:$0xff] %v2426_v41  ;;  %v2459_v12 = vmul.f32 %v843_v14, %v3421_v56  ;;  %v955_v43 = vmul.f32 %v2410_v48, %v3422_v57  ;;  %v1022_v44 = vmul.f32 %v2401_v61, %v3423_v31  ;;  %v876_v1 = vadd.f32 %v2461_v6, %v852_v13  ;;  %v3426_v57 = vld [vmem:[#allocation22_spill] sm:$0xff]  ;;  %v3427_v31 = vld [vmem:[#allocation13_spill] sm:$0xff]  ;;  %v3433_v41 = vld [vmem:[#allocation23_spill] sm:$0xff] }
  0xd8   : > { %3411 = vst [vmem:[#allocation68_spill] sm:$0xff] %v2429_v62  ;;  %v962_v32 = vadd.f32 %v954_v52, %v2461_v6  ;;  %v2469_v15 = vadd.f32 1e-05, %v734_v29  ;;  %v2471_v8 = vadd.f32 1e-05, %v735_v5  ;;  %v2474_v38 = vmul.f32 %v843_v14, %v3424_v49  ;;  %v3428_v13 = vld [vmem:[#allocation14_spill] sm:$0xff] }
  0xd9   : > { %3412 = vst [vmem:[#allocation69_spill] sm:$0xff] %v2432_v35  ;;  %v2477_v56 = vmul.f32 %v843_v14, %v3425_v9  ;;  %v877_v37 = vadd.f32 %v2461_v6, %v853_v26  ;;  %v1023_v59 = vmul.f32 %v2410_v48, %v3426_v57  ;;  %v2483_v35 = vmul.f32 %v842_v53, %v3427_v31  ;;  %v3429_v29 = vld [vmem:[#allocation15_spill] sm:$0xff]  ;;  %v3430_v9 = vld [vmem:[#allocation24_spill] sm:$0xff]  ;;  %v3431_v26 = vld [vmem:[#allocation25_spill] sm:$0xff] }
  0xda   : > { %v2486_v52 = vmul.f32 %v843_v14, %v3428_v13  ;;  %v2489_v5 = vmul.f32 %v842_v53, %v3429_v29  ;;  %1666 = vrsqrt.f32 %v2469_v15  ;;  %v963_v49 = vadd.f32 %v955_v43, %v2461_v6  ;;  %v3432_v57 = vld [vmem:[#allocation18_spill] sm:$0xff] }
  0xdb   : > { %v1090_v45 = vmul.f32 %v2401_v61, %v3430_v9  ;;  %v1091_v62 = vmul.f32 %v2410_v48, %v3431_v26  ;;  %1668 = vrsqrt.f32 %v2471_v8  ;;  %v2499_v31 = vmul.f32 %v843_v14, %v3432_v57  ;;  %v3435_v57 = vld [vmem:[#allocation28_spill] sm:$0xff] }
  0xdc   : > { %v893_v13 = vmul.f32 %v2445_v2, %v876_v1  ;;  %v978_v29 = vmul.f32 %v962_v32, %v2445_v2  ;;  %v1030_v28 = vadd.f32 %v1022_v44, %v2461_v6  ;;  %vm884_vm12 = vcmp.ge.f32.partialorder %v876_v1, 0.0 }
  0xdd   : > { %v894_v43 = vmul.f32 %v2445_v2, %v877_v37  ;;  %vm970_vm13 = vcmp.ge.f32.partialorder %v962_v32, 0.0  ;;  %v1031_v9 = vadd.f32 %v1023_v59, %v2461_v6  ;;  %v2507_v11 = vmul.f32 %v842_v53, %v3433_v41 }
  0xde   : > { %v2510_v26 = vmul.f32 %v843_v14, %v2014_v30  ;;  %v2513_v16 = vmul.f32 %v842_v53, %v3435_v57  ;;  %vm885_vm14 = vcmp.ge.f32.partialorder %v877_v37, 0.0  ;;  %v2516_v0 = vmul.f32 %v843_v14, %v3437_v60  ;;  %v3442_v60 = vld [vmem:[#allocation26_spill] sm:$0xff] }
  0xdf   : > { %vm971_vm15 = vcmp.ge.f32.partialorder %v963_v49, 0.0  ;;  %v1098_v44 = vadd.f32 %v1090_v45, %v2461_v6  ;;  %v1099_v23 = vadd.f32 %v1091_v62, %v2461_v6  ;;  %v2522_v59 = vsel %vm884_vm12, %v876_v1, %v893_v13  ;;  %v3443_v45 = vld [vmem:[#allocation27_spill] sm:$0xff]  ;;  %v3444_v1 = vld [vmem:[#allocation30_spill] sm:$0xff] }
  0xe0   : > { %3434 = vst [vmem:[#allocation16_spill] sm:$0xff] %v2510_v26  ;;  %v2520_v4 = vpop.eup %1666  ;;  %v979_v41 = vmul.f32 %v963_v49, %v2445_v2  ;;  %v2525_v30 = vsel %vm970_vm13, %v962_v32, %v978_v29  ;;  %vm1038_vm0 = vcmp.ge.f32.partialorder %v1030_v28, 0.0  ;;  %v2529_v57 = vsel %vm885_vm14, %v877_v37, %v894_v43  ;;  %v3446_v29 = vld [vmem:[#allocation32_spill] sm:$0xff] }
  0xe1   : > { %3436 = vst [vmem:[#allocation19_spill] sm:$0xff] %v2513_v16  ;;  %v2527_v53 = vpop.eup %1668  ;;  %vm1039_vm1 = vcmp.ge.f32.partialorder %v1031_v9, 0.0  ;;  %v1158_v14 = vmul.f32 %v2401_v61, %v3442_v60  ;;  %v1159_v62 = vmul.f32 %v2410_v48, %v3443_v45  ;;  %v1046_v55 = vmul.f32 %v1030_v28, %v2445_v2  ;;  %v3447_v60 = vld [vmem:[#allocation33_spill] sm:$0xff] }
  0xe2   : > { %3438 = vst [vmem:[#allocation5_spill] sm:$0xff] %v2516_v0  ;;  %v1226_v13 = vmul.f32 %v2401_v61, %v3444_v1  ;;  %v1047_v37 = vmul.f32 %v1031_v9, %v2445_v2  ;;  %vm1106_vm2 = vcmp.ge.f32.partialorder %v1098_v44, 0.0  ;;  %v1114_v43 = vmul.f32 %v1098_v44, %v2445_v2 }
  0xe3   : > { %3439 = vst [vmem:[#allocation7_spill] sm:$0xff] %v2522_v59  ;;  %v3445_v59 = vld [vmem:[#allocation31_spill] sm:$0xff]  ;;  %v1115_v45 = vmul.f32 %v1099_v23, %v2445_v2  ;;  %v1362_v33 = vmul.f32 %v2401_v61, %v3448_v51  ;;  %v787_v1 = vmul.f32 %v2520_v4, %v2469_v15  ;;  %vm1107_vm3 = vcmp.ge.f32.partialorder %v1099_v23, 0.0 }
  0xe4   : > { %3440 = vst [vmem:[#allocation17_spill] sm:$0xff] %v2525_v30  ;;  %v1227_v32 = vmul.f32 %v2410_v48, %v3445_v59  ;;  %v1294_v30 = vmul.f32 %v2401_v61, %v3446_v29  ;;  %v797_v59 = vmul.f32 %v2527_v53, %v2471_v8  ;;  %v1166_v29 = vadd.f32 %v1158_v14, %v2461_v6 }
  0xe5   : > { %3441 = vst [vmem:[#allocation9_spill] sm:$0xff] %v2529_v57  ;;  %v1295_v57 = vmul.f32 %v2410_v48, %v3447_v60  ;;  %v1167_v36 = vadd.f32 %v1159_v62, %v2461_v6  ;;  %v1363_v7 = vmul.f32 %v2410_v48, %v3449_v25  ;;  %v2558_v60 = vsel %vm971_vm15, %v963_v49, %v979_v41  ;;  %v2576_v41 = vpop.permute.xlu1 %835 }
  0xe6   : > { %v1234_v0 = vadd.f32 %v1226_v13, %v2461_v6  ;;  %v1235_v51 = vadd.f32 %v1227_v32, %v2461_v6  ;;  %v1302_v61 = vadd.f32 %v1294_v30, %v2461_v6  ;;  %v2564_v16 = vsel %vm1038_vm0, %v1030_v28, %v1046_v55 }
  0xe7   : > { %v2567_v26 = vsel %vm1039_vm1, %v1031_v9, %v1047_v37  ;;  %v2570_v14 = vsel %vm1106_vm2, %v1098_v44, %v1114_v43  ;;  %v1303_v25 = vadd.f32 %v1295_v57, %v2461_v6  ;;  %v2573_v48 = vsel %vm1107_vm3, %v1099_v23, %v1115_v45 }
  0xe8   : > { %3450 = vst [vmem:[#allocation11_spill] sm:$0xff] %v2573_v48  ;;  %v1370_v49 = vadd.f32 %v1362_v33, %v2461_v6  ;;  %v788_v62 = vmul.f32 %v2520_v4, %v787_v1  ;;  %v798_v30 = vmul.f32 %v2527_v53, %v797_v59  ;;  %vm1174_vm4 = vcmp.ge.f32.partialorder %v1166_v29, 0.0 }
  0xe9   : > { %v1182_v55 = vmul.f32 %v1166_v29, %v2445_v2  ;;  %v1183_v28 = vmul.f32 %v1167_v36, %v2445_v2  ;;  %v1371_v9 = vadd.f32 %v1363_v7, %v2461_v6  ;;  %vm1175_vm5 = vcmp.ge.f32.partialorder %v1167_v36, 0.0 }
  0xea   : > { %v1250_v44 = vmul.f32 %v1234_v0, %v2445_v2  ;;  %v1251_v23 = vmul.f32 %v1235_v51, %v2445_v2  ;;  %v1318_v33 = vmul.f32 %v1302_v61, %v2445_v2  ;;  %vm1242_vm6 = vcmp.ge.f32.partialorder %v1234_v0, 0.0 }
  0xeb   : > { %vm1243_vm7 = vcmp.ge.f32.partialorder %v1235_v51, 0.0  ;;  %vm1310_vm8 = vcmp.ge.f32.partialorder %v1302_v61, 0.0  ;;  %v1319_v57 = vmul.f32 %v1303_v25, %v2445_v2  ;;  %vm1311_vm9 = vcmp.ge.f32.partialorder %v1303_v25, 0.0 }
  0xec   : > { %v1386_v13 = vmul.f32 %v1370_v49, %v2445_v2  ;;  %v789_v32 = vmul.f32 0.5, %v788_v62  ;;  %v799_v37 = vmul.f32 0.5, %v798_v30  ;;  %v2589_v43 = vsel %vm1174_vm4, %v1166_v29, %v1182_v55  ;;  %v3454_v62 = vld [vmem:[#allocation44_spill] sm:$0xff]  ;;  %v3456_v29 = vld [vmem:[#allocation45_spill] sm:$0xff] }
  0xed   : > { %v2591_v7 = vsel %vm1175_vm5, %v1167_v36, %v1183_v28  ;;  %vm1378_vm10 = vcmp.ge.f32.partialorder %v1370_v49, 0.0  ;;  %v1387_v6 = vmul.f32 %v1371_v9, %v2445_v2  ;;  %v2594_v45 = vsel %vm1242_vm6, %v1234_v0, %v1250_v44  ;;  %v860_v28 = vpop.permute.xlu1 %859 }
  0xee   : > { %v2596_v1 = vsel %vm1243_vm7, %v1235_v51, %v1251_v23  ;;  %v2598_v59 = vsel %vm1310_vm8, %v1302_v61, %v1318_v33  ;;  %vm1379_vm11 = vcmp.ge.f32.partialorder %v1371_v9, 0.0  ;;  %v2600_v48 = vsel %vm1311_vm9, %v1303_v25, %v1319_v57  ;;  %v3460_v25 = vld [vmem:[#allocation48_spill] sm:$0xff]  ;;  %v3463_v57 = vld [vmem:[#allocation49_spill] sm:$0xff] }
  0xef   : > { %3451 = vst [vmem:[#allocation6_spill] sm:$0xff] %v2596_v1  ;;  %v2604_v30 = vadd.f32 %v3454_v62, %v2341_v24  ;;  %v2608_v36 = vadd.f32 %v3456_v29, %v2381_v58  ;;  %v2612_v55 = vadd.f32 %v2205_v20, %v2384_v39  ;;  %v2614_v0 = vsel %vm1378_vm10, %v1370_v49, %v1386_v13 }
  0xf0   : > { %3452 = vst [vmem:[#allocation8_spill] sm:$0xff] %v2598_v59  ;;  %v790_v51 = vsub.f32 1.5, %v789_v32  ;;  %v800_v61 = vsub.f32 1.5, %v799_v37  ;;  %v2618_v44 = vadd.f32 %v3460_v25, %v2387_v47  ;;  %v2620_v23 = vsel %vm1379_vm11, %v1371_v9, %v1387_v6  ;;  %v3465_v32 = vld [vmem:[#allocation50_spill] sm:$0xff] }
  0xf1   : > { %3453 = vst [vmem:[#allocation20_spill] sm:$0xff] %v2600_v48  ;;  %v874_v24 = vadd.f32 %v860_v28, %v2439_v21  ;;  %v875_v58 = vadd.f32 %v860_v28, %v2456_v19  ;;  %v960_v33 = vadd.f32 %v2442_v17, %v860_v28  ;;  %vm792_vm12 = vweird.f32 %v2469_v15 }
  0xf2   : > { %3455 = vst [vmem:[#allocation21_spill] sm:$0xff] %v2604_v30  ;;  %vm802_vm13 = vweird.f32 %v2471_v8  ;;  %v961_v20 = vadd.f32 %v2459_v12, %v860_v28  ;;  %v2629_v39 = vadd.f32 %v2450_v22, %v860_v28  ;;  %vm793_vm14 = vweird.f32 %v2520_v4 }
  0xf3   : > { %3457 = vst [vmem:[#allocation10_spill] sm:$0xff] %v2608_v36  ;;  %v378_v47 = vmul.f32 %v2604_v30, %v2604_v30  ;;  %v379_v21 = vmul.f32 %v2608_v36, %v2608_v36  ;;  %v420_v17 = vmul.f32 %v2612_v55, %v2612_v55  ;;  %v791_v19 = vmul.f32 %v2520_v4, %v790_v51  ;;  %vm2659_vm0 = vmor %vm792_vm12, %vm793_vm14  ;;  %v3489_v36 = vld [vmem:[#allocation52_spill] sm:$0xff]  ;;  %v3492_v30 = vld [vmem:[#allocation58_spill] sm:$0xff] }
  0xf4   : > { %3458 = vst [vmem:[#allocation12_spill] sm:$0xff] %v2612_v55  ;;  %v801_v49 = vmul.f32 %v2527_v53, %v800_v61  ;;  %vm803_vm15 = vweird.f32 %v2527_v53  ;;  %v421_v22 = vmul.f32 %v2618_v44, %v2618_v44  ;;  %v2644_v12 = vadd.f32 %v2474_v38, %v860_v28 }
  0xf5   : > { %3459 = vst [vmem:[#allocation22_spill] sm:$0xff] %v2614_v0  ;;  %v2647_v9 = vadd.f32 %v2453_v10, %v860_v28  ;;  %v2651_v13 = vadd.f32 %v3463_v57, %v2390_v63  ;;  %v2655_v37 = vadd.f32 %v3465_v32, %v2396_v46  ;;  %v2664_v38 = vadd.f32 %v2477_v56, %v860_v28  ;;  %vm2677_vm1 = vmor %vm802_vm13, %vm803_vm15  ;;  %v3478_v46 = vld [vmem:[#allocation36_spill] sm:$0xff] }
  0xf6   : > { %3461 = vst [vmem:[#allocation13_spill] sm:$0xff] %v2618_v44  ;;  %v2667_v10 = vadd.f32 %v2483_v35, %v860_v28  ;;  %v2670_v62 = vadd.f32 %v2486_v52, %v860_v28  ;;  %v2673_v63 = vadd.f32 %v2489_v5, %v860_v28  ;;  %v2682_v15 = vadd.f32 %v2499_v31, %v860_v28  ;;  %v3488_v44 = vld [vmem:[#allocation51_spill] sm:$0xff] }
  0xf7   : > { %3462 = vst [vmem:[#allocation14_spill] sm:$0xff] %v2620_v23  ;;  %v2685_v56 = vadd.f32 %v2507_v11, %v860_v28  ;;  %v2689_v35 = vadd.f32 %v2258_v27, %v2399_v50  ;;  %v2693_v52 = vadd.f32 %v2262_v40, %v2405_v54  ;;  %v795_v8 = vsel %vm2659_vm0, %v2520_v4, %v791_v19 }
  0xf8   : > { %3464 = vst [vmem:[#allocation15_spill] sm:$0xff] %v2651_v13  ;;  %v805_v5 = vsel %vm2677_vm1, %v2527_v53, %v801_v49  ;;  %v428_v31 = vadd.f32 %v420_v17, %v378_v47  ;;  %v429_v29 = vadd.f32 %v421_v22, %v379_v21  ;;  %v470_v11 = vmul.f32 %v2651_v13, %v2651_v13  ;;  %v3476_v47 = vld [vmem:[#allocation19_spill] sm:$0xff]  ;;  %v3477_v17 = vld [vmem:[#allocation5_spill] sm:$0xff]  ;;  %v2730_v49 = vpop.permute.xlu0 %867 }
  0xf9   : > { %3466 = vst [vmem:[#allocation24_spill] sm:$0xff] %v2655_v37  ;;  %v471_v27 = vmul.f32 %v2655_v37, %v2655_v37  ;;  %v2707_v40 = vadd.f32 %v2266_v18, %v2408_v3  ;;  %v2711_v50 = vadd.f32 %v2272_v42, %v2413_v34  ;;  %vm882_vm2 = vcmp.ge.f32.partialorder %v874_v24, 0.0  ;;  %v3475_v42 = vld [vmem:[#allocation16_spill] sm:$0xff]  ;;  %v3491_v13 = vld [vmem:[#allocation55_spill] sm:$0xff] }
  0xfa   : > { %3471 = vst [vmem:[#allocation25_spill] sm:$0xff] %v2689_v35  ;;  %vm883_vm3 = vcmp.ge.f32.partialorder %v875_v58, 0.0  ;;  %v891_v54 = vmul.f32 %v2445_v2, %v874_v24  ;;  %v892_v4 = vmul.f32 %v2445_v2, %v875_v58  ;;  %v846_v53 = vmul.f32 %v2576_v41, %v795_v8 }
  0xfb   : > { %3472 = vst [vmem:[#allocation18_spill] sm:$0xff] %v2693_v52  ;;  %v847_v51 = vmul.f32 %v2576_v41, %v805_v5  ;;  %v976_v61 = vmul.f32 %v960_v33, %v2445_v2  ;;  %v977_v25 = vmul.f32 %v961_v20, %v2445_v2  ;;  %vm968_vm4 = vcmp.ge.f32.partialorder %v960_v33, 0.0 }
  0xfc   : > { %3473 = vst [vmem:[#allocation23_spill] sm:$0xff] %v2707_v40  ;;  %vm969_vm5 = vcmp.ge.f32.partialorder %v961_v20, 0.0  ;;  %v478_v18 = vadd.f32 %v470_v11, %v428_v31  ;;  %v479_v3 = vadd.f32 %v471_v27, %v429_v29  ;;  %v2720_v34 = vadd.f32 %v3475_v42, %v860_v28  ;;  %v2742_v31 = vpop.permute.xlu2 %908 }
  0xfd   : > { %3474 = vst [vmem:[#allocation28_spill] sm:$0xff] %v2711_v50  ;;  %v2723_v21 = vadd.f32 %v3476_v47, %v860_v28  ;;  %v2726_v19 = vadd.f32 %v3477_v17, %v860_v28  ;;  %v520_v41 = vmul.f32 %v2689_v35, %v2689_v35  ;;  %v899_v22 = vsel %vm882_vm2, %v874_v24, %v891_v54  ;;  %v3479_v28 = vld [vmem:[#allocation37_spill] sm:$0xff]  ;;  %v3480_v24 = vld [vmem:[#allocation38_spill] sm:$0xff] }
  0xfe   : > { %v900_v57 = vsel %vm883_vm3, %v875_v58, %v892_v4  ;;  %v521_v32 = vmul.f32 %v2693_v52, %v2693_v52  ;;  %v2738_v6 = vmul.f32 %v2707_v40, %v2707_v40  ;;  %v854_v8 = vmul.f32 %v846_v53, %v3478_v46  ;;  %v3483_v46 = vld [vmem:[#allocation42_spill] sm:$0xff] }
  0xff   : > { %v855_v5 = vmul.f32 %v847_v51, %v3479_v28  ;;  %v984_v29 = vsel %vm968_vm4, %v960_v33, %v976_v61  ;;  %v985_v11 = vsel %vm969_vm5, %v961_v20, %v977_v25  ;;  %v956_v27 = vmul.f32 %v846_v53, %v3480_v24  ;;  %v3484_v28 = vld [vmem:[#allocation41_spill] sm:$0xff]  ;;  %v3490_v35 = vld [vmem:[#allocation54_spill] sm:$0xff] }
 0x100   : > { %v2747_v58 = vadd.f32 %v520_v41, %v478_v18  ;;  %v2749_v54 = vadd.f32 %v521_v32, %v479_v3  ;;  %v2753_v4 = vmul.f32 %v2711_v50, %v2711_v50  ;;  %v878_v42 = vadd.f32 %v2730_v49, %v854_v8  ;;  %v3481_v3 = vld [vmem:[#allocation39_spill] sm:$0xff]  ;;  %v3482_v32 = vld [vmem:[#allocation40_spill] sm:$0xff] }
 0x101   : > { %v879_v47 = vadd.f32 %v2730_v49, %v855_v5  ;;  %v2758_v17 = vmul.f32 %v2742_v31, %v899_v22  ;;  %v2761_v33 = vmul.f32 %v2742_v31, %v900_v57  ;;  %v964_v20 = vadd.f32 %v956_v27, %v2730_v49  ;;  %v3487_v50 = vld [vmem:[#allocation47_spill] sm:$0xff] }
 0x102   : > { %v2765_v61 = vmul.f32 %v984_v29, %v2742_v31  ;;  %v2768_v25 = vmul.f32 %v985_v11, %v2742_v31  ;;  %v2772_v18 = vmul.f32 %v2629_v39, %v2445_v2  ;;  %v957_v41 = vmul.f32 %v847_v51, %v3481_v3  ;;  %v3485_v29 = vld [vmem:[#allocation43_spill] sm:$0xff]  ;;  %v3486_v11 = vld [vmem:[#allocation46_spill] sm:$0xff] }
 0x103   : > { %v1024_v22 = vmul.f32 %v846_v53, %v3482_v32  ;;  %v1092_v8 = vmul.f32 %v846_v53, %v3483_v46  ;;  %v2779_v57 = vmul.f32 %v2644_v12, %v2445_v2  ;;  %v1025_v5 = vmul.f32 %v847_v51, %v3484_v28 }
 0x104   : > { %v1093_v24 = vmul.f32 %v847_v51, %v3485_v29  ;;  %v1160_v27 = vmul.f32 %v846_v53, %v3486_v11  ;;  %v1161_v40 = vmul.f32 %v847_v51, %v3487_v50  ;;  %v895_v52 = vmul.f32 %v2445_v2, %v878_v42  ;;  %v2798_v48 = vpop.permute.xlu2 %916 }
 0x105   : > { %v896_v3 = vmul.f32 %v2445_v2, %v879_v47  ;;  %v965_v32 = vadd.f32 %v957_v41, %v2730_v49  ;;  %v1032_v46 = vadd.f32 %v1024_v22, %v2730_v49  ;;  %vm886_vm6 = vcmp.ge.f32.partialorder %v878_v42, 0.0  ;;  %v3493_v41 = vld [vmem:[#allocation59_spill] sm:$0xff] }
 0x106   : > { %vm887_vm7 = vcmp.ge.f32.partialorder %v879_v47, 0.0  ;;  %v980_v37 = vmul.f32 %v964_v20, %v2445_v2  ;;  %v1033_v28 = vadd.f32 %v1025_v5, %v2730_v49  ;;  %v1228_v29 = vmul.f32 %v846_v53, %v3488_v44 }
 0x107   : > { %v1229_v11 = vmul.f32 %v847_v51, %v3489_v36  ;;  %v1296_v50 = vmul.f32 %v846_v53, %v3490_v35  ;;  %vm972_vm8 = vcmp.ge.f32.partialorder %v964_v20, 0.0  ;;  %v1297_v55 = vmul.f32 %v847_v51, %v3491_v13 }
 0x108   : > { %v1364_v23 = vmul.f32 %v846_v53, %v3492_v30  ;;  %v1365_v0 = vmul.f32 %v847_v51, %v3493_v41  ;;  %v1100_v22 = vadd.f32 %v1092_v8, %v2730_v49  ;;  %v903_v59 = vsel %vm886_vm6, %v878_v42, %v895_v52 }
 0x109   : > { %v904_v1 = vsel %vm887_vm7, %v879_v47, %v896_v3  ;;  %v981_v5 = vmul.f32 %v965_v32, %v2445_v2  ;;  %v1101_v44 = vadd.f32 %v1093_v24, %v2730_v49  ;;  %vm973_vm9 = vcmp.ge.f32.partialorder %v965_v32, 0.0 }
 0x10a   : > { %v988_v36 = vsel %vm972_vm8, %v964_v20, %v980_v37  ;;  %vm1040_vm10 = vcmp.ge.f32.partialorder %v1032_v46, 0.0  ;;  %vm1041_vm11 = vcmp.ge.f32.partialorder %v1033_v28, 0.0  ;;  %v1048_v13 = vmul.f32 %v1032_v46, %v2445_v2 }
 0x10b   : > { %v1049_v30 = vmul.f32 %v1033_v28, %v2445_v2  ;;  %v1168_v35 = vadd.f32 %v1160_v27, %v2730_v49  ;;  %v1169_v53 = vadd.f32 %v1161_v40, %v2730_v49  ;;  %v2807_v51 = vmul.f32 %v2798_v48, %v903_v59  ;;  %v2819_v27 = vpop.permute.xlu1 %871 }
 0x10c   : > { %v2810_v52 = vmul.f32 %v2798_v48, %v904_v1  ;;  %v1236_v42 = vadd.f32 %v1228_v29, %v2730_v49  ;;  %v1237_v37 = vadd.f32 %v1229_v11, %v2730_v49  ;;  %v989_v47 = vsel %vm973_vm9, %v965_v32, %v981_v5  ;;  %3495 = vst [vmem:[#allocation26_spill] sm:$0xff] %v2819_v27 }
 0x10d   : > { %v2815_v20 = vmul.f32 %v988_v36, %v2798_v48  ;;  %v1304_v8 = vadd.f32 %v1296_v50, %v2730_v49  ;;  %v1305_v24 = vadd.f32 %v1297_v55, %v2730_v49  ;;  %vm1108_vm12 = vcmp.ge.f32.partialorder %v1100_v22, 0.0 }
 0x10e   : > { %vm1109_vm13 = vcmp.ge.f32.partialorder %v1101_v44, 0.0  ;;  %v1116_v59 = vmul.f32 %v1100_v22, %v2445_v2  ;;  %v1117_v1 = vmul.f32 %v1101_v44, %v2445_v2  ;;  %v1056_v40 = vsel %vm1040_vm10, %v1032_v46, %v1048_v13 }
 0x10f   : > { %3494 = vst [vmem:[#allocation29_spill] sm:$0xff] %v2815_v20  ;;  %v1057_v3 = vsel %vm1041_vm11, %v1033_v28, %v1049_v30  ;;  %v1184_v32 = vmul.f32 %v1168_v35, %v2445_v2  ;;  %v1185_v29 = vmul.f32 %v1169_v53, %v2445_v2  ;;  %vm1176_vm14 = vcmp.ge.f32.partialorder %v1168_v35, 0.0 }
 0x110   : > { %vm1177_vm15 = vcmp.ge.f32.partialorder %v1169_v53, 0.0  ;;  %v1252_v55 = vmul.f32 %v1236_v42, %v2445_v2  ;;  %v1253_v11 = vmul.f32 %v1237_v37, %v2445_v2  ;;  %vm1244_vm0 = vcmp.ge.f32.partialorder %v1236_v42, 0.0 }
 0x111   : > { %vm1245_vm1 = vcmp.ge.f32.partialorder %v1237_v37, 0.0  ;;  %v1320_v50 = vmul.f32 %v1304_v8, %v2445_v2  ;;  %v1321_v41 = vmul.f32 %v1305_v24, %v2445_v2  ;;  %vm1036_vm2 = vcmp.ge.f32.partialorder %v2629_v39, 0.0 }
 0x112   : > { %v1124_v46 = vsel %vm1108_vm12, %v1100_v22, %v1116_v59  ;;  %vm1312_vm3 = vcmp.ge.f32.partialorder %v1304_v8, 0.0  ;;  %vm1313_vm4 = vcmp.ge.f32.partialorder %v1305_v24, 0.0  ;;  %v1372_v28 = vadd.f32 %v1364_v23, %v2730_v49 }
 0x113   : > { %v1125_v5 = vsel %vm1109_vm13, %v1101_v44, %v1117_v1  ;;  %v1192_v36 = vsel %vm1176_vm14, %v1168_v35, %v1184_v32  ;;  %v1193_v13 = vsel %vm1177_vm15, %v1169_v53, %v1185_v29  ;;  %v1373_v30 = vadd.f32 %v1365_v0, %v2730_v49  ;;  %v2851_v49 = vpop.permute.xlu1 %912  ;;  %v3498_v32 = vld [vmem:[#allocation7_spill] sm:$0xff] }
 0x114   : > { %vm1037_vm5 = vcmp.ge.f32.partialorder %v2644_v12, 0.0  ;;  %v2838_v27 = vmul.f32 %v989_v47, %v2798_v48  ;;  %v2841_v20 = vmul.f32 %v1056_v40, %v2798_v48  ;;  %v1260_v22 = vsel %vm1244_vm0, %v1236_v42, %v1252_v55 }
 0x115   : > { %v1261_v59 = vsel %vm1245_vm1, %v1237_v37, %v1253_v11  ;;  %v2846_v23 = vmul.f32 %v1057_v3, %v2798_v48  ;;  %v2849_v44 = vmul.f32 %v1124_v46, %v2798_v48  ;;  %v1328_v35 = vsel %vm1312_vm3, %v1304_v8, %v1320_v50  ;;  %v3499_v50 = vld [vmem:[#allocation64_spill] sm:$0xff] }
 0x116   : > { %v1329_v0 = vsel %vm1313_vm4, %v1305_v24, %v1321_v41  ;;  %v2854_v53 = vmul.f32 %v1125_v5, %v2798_v48  ;;  %v2857_v47 = vmul.f32 %v1192_v36, %v2798_v48  ;;  %v2860_v42 = vmul.f32 %v1193_v13, %v2798_v48  ;;  %v3500_v41 = vld [vmem:[#allocation53_spill] sm:$0xff]  ;;  %v3502_v36 = vld [vmem:[#allocation56_spill] sm:$0xff] }
 0x117   : > { %v1388_v37 = vmul.f32 %v1372_v28, %v2445_v2  ;;  %v2864_v1 = vmul.f32 %v1260_v22, %v2798_v48  ;;  %v2867_v40 = vmul.f32 %v1261_v59, %v2798_v48  ;;  %vm1380_vm6 = vcmp.ge.f32.partialorder %v1372_v28, 0.0  ;;  %v3501_v5 = vld [vmem:[#allocation65_spill] sm:$0xff] }
 0x118   : > { %vm1381_vm7 = vcmp.ge.f32.partialorder %v1373_v30, 0.0  ;;  %v2870_v8 = vmul.f32 %v1328_v35, %v2798_v48  ;;  %v2873_v24 = vmul.f32 %v1329_v0, %v2798_v48  ;;  %v1389_v3 = vmul.f32 %v1373_v30, %v2445_v2  ;;  %v3504_v59 = vld [vmem:[#allocation9_spill] sm:$0xff]  ;;  %v3505_v0 = vld [vmem:[#allocation66_spill] sm:$0xff] }
 0x119   : > { %v925_v29 = vmul.f32 %v2851_v49, %v3498_v32  ;;  %v578_v55 = vadd.f32 %v2738_v6, %v2747_v58  ;;  %v579_v11 = vadd.f32 %v2753_v4, %v2749_v54  ;;  %v2884_v46 = vadd.f32 %v3500_v41, %v3499_v50  ;;  %v3506_v32 = vld [vmem:[#allocation57_spill] sm:$0xff]  ;;  %v3507_v6 = vld [vmem:[#allocation67_spill] sm:$0xff]  ;;  %v3508_v58 = vld [vmem:[#allocation60_spill] sm:$0xff] }
 0x11a   : > { %3496 = vst [vmem:[#allocation27_spill] sm:$0xff] %v2870_v8  ;;  %v2888_v13 = vadd.f32 %v3502_v36, %v3501_v5  ;;  %v1396_v22 = vsel %vm1380_vm6, %v1372_v28, %v1388_v37  ;;  %v926_v35 = vmul.f32 %v2851_v49, %v3504_v59  ;;  %v2898_v8 = vadd.f32 %v3508_v58, %v3507_v6  ;;  %v3509_v50 = vld [vmem:[#allocation68_spill] sm:$0xff]  ;;  %v3510_v41 = vld [vmem:[#allocation61_spill] sm:$0xff]  ;;  %v3512_v5 = vld [vmem:[#allocation62_spill] sm:$0xff] }
 0x11b   : > { %3497 = vst [vmem:[#allocation30_spill] sm:$0xff] %v2873_v24  ;;  %v2894_v24 = vadd.f32 %v3506_v32, %v3505_v0  ;;  %v620_v54 = vmul.f32 %v2884_v46, %v2884_v46  ;;  %v2906_v28 = vadd.f32 %v3510_v41, %v3509_v50  ;;  %v3511_v37 = vld [vmem:[#allocation69_spill] sm:$0xff]  ;;  %v1397_v59 = vsel %vm1381_vm7, %v1373_v30, %v1389_v3 }
 0x11c   : > { %3503 = vst [vmem:[#allocation31_spill] sm:$0xff] %v2888_v13  ;;  %v621_v4 = vmul.f32 %v2888_v13, %v2888_v13  ;;  %v2910_v36 = vadd.f32 %v3512_v5, %v3511_v37  ;;  %v3513_v0 = vld [vmem:[#allocation17_spill] sm:$0xff]  ;;  %v995_v6 = vmul.f32 %v2558_v60, %v2851_v49  ;;  %v1052_v58 = vsel %vm1036_vm2, %v2629_v39, %v2772_v18 }
 0x11d   : > { %v994_v32 = vmul.f32 %v3513_v0, %v2851_v49  ;;  %v628_v13 = vadd.f32 %v620_v54, %v578_v55  ;;  %v670_v41 = vmul.f32 %v2894_v24, %v2894_v24  ;;  %v671_v37 = vmul.f32 %v2898_v8, %v2898_v8 }
 0x11e   : > { %v629_v50 = vadd.f32 %v621_v4, %v579_v11  ;;  %v2926_v30 = vmul.f32 %v1396_v22, %v2798_v48  ;;  %v1053_v60 = vsel %vm1037_vm5, %v2644_v12, %v2779_v57  ;;  %vm1104_vm8 = vcmp.ge.f32.partialorder %v2647_v9, 0.0 }
 0x11f   : > { %v1112_v39 = vmul.f32 %v2647_v9, %v2445_v2  ;;  %v678_v18 = vadd.f32 %v670_v41, %v628_v13  ;;  %v720_v55 = vmul.f32 %v2906_v28, %v2906_v28  ;;  %v721_v11 = vmul.f32 %v2910_v36, %v2910_v36 }
 0x120   : > { %v679_v3 = vadd.f32 %v671_v37, %v629_v50  ;;  %v2940_v22 = vmul.f32 %v1397_v59, %v2798_v48  ;;  %v2943_v54 = vadd.f32 %v925_v29, %v2758_v17  ;;  %v2946_v12 = vadd.f32 %v926_v35, %v2761_v33  ;;  %v3514_v37 = vld [vmem:[#allocation11_spill] sm:$0xff] }
 0x121   : > { %v2949_v57 = vadd.f32 %v994_v32, %v2765_v61  ;;  %v2952_v13 = vadd.f32 %v995_v6, %v2768_v25  ;;  %v1113_v4 = vmul.f32 %v2664_v38, %v2445_v2  ;;  %v728_v5 = vadd.f32 %v720_v55, %v678_v18 }
 0x122   : > { %v729_v0 = vadd.f32 %v721_v11, %v679_v3  ;;  %v1062_v48 = vmul.f32 %v2564_v16, %v2851_v49  ;;  %v1063_v17 = vmul.f32 %v2567_v26, %v2851_v49  ;;  %vm1105_vm9 = vcmp.ge.f32.partialorder %v2664_v38, 0.0 }
 0x123   : > { %v1120_v33 = vsel %vm1104_vm8, %v2647_v9, %v1112_v39  ;;  %v1180_v61 = vmul.f32 %v2667_v10, %v2445_v2  ;;  %v1181_v25 = vmul.f32 %v2670_v62, %v2445_v2  ;;  %v736_v29 = vmul.f32 0.125, %v728_v5 }
 0x124   : > { %v737_v35 = vmul.f32 0.125, %v729_v0  ;;  %v1060_v59 = vmul.f32 %v1052_v58, %v2742_v31  ;;  %v1061_v16 = vmul.f32 %v1053_v60, %v2742_v31  ;;  %vm1172_vm10 = vcmp.ge.f32.partialorder %v2667_v10, 0.0 }
 0x125   : > { %vm1173_vm11 = vcmp.ge.f32.partialorder %v2670_v62, 0.0  ;;  %v1121_v26 = vsel %vm1105_vm9, %v2664_v38, %v1113_v4  ;;  %v1130_v9 = vmul.f32 %v2570_v14, %v2851_v49  ;;  %v2975_v32 = vadd.f32 1e-05, %v736_v29 }
 0x126   : > { %v2977_v6 = vadd.f32 1e-05, %v737_v35  ;;  %v2979_v50 = vadd.f32 %v1062_v48, %v1060_v59  ;;  %v2981_v41 = vadd.f32 %v1063_v17, %v1061_v16  ;;  %v1128_v58 = vmul.f32 %v1120_v33, %v2742_v31 }
 0x127   : > { %v1131_v60 = vmul.f32 %v3514_v37, %v2851_v49  ;;  %v1188_v39 = vsel %vm1172_vm10, %v2667_v10, %v1180_v61  ;;  %v1189_v38 = vsel %vm1173_vm11, %v2670_v62, %v1181_v25  ;;  %v1248_v14 = vmul.f32 %v2673_v63, %v2445_v2  ;;  %v3516_v37 = vld [vmem:[#allocation8_spill] sm:$0xff] }
 0x128   : > { %1670 = vrsqrt.f32 %v2975_v32  ;;  %v1129_v18 = vmul.f32 %v1121_v26, %v2742_v31  ;;  %vm1240_vm12 = vcmp.ge.f32.partialorder %v2673_v63, 0.0  ;;  %v1249_v3 = vmul.f32 %v2682_v15, %v2445_v2 }
 0x129   : > { %1672 = vrsqrt.f32 %v2977_v6  ;;  %v2996_v55 = vadd.f32 %v1130_v9, %v1128_v58  ;;  %v1198_v10 = vmul.f32 %v2589_v43, %v2851_v49  ;;  %v1199_v62 = vmul.f32 %v2591_v7, %v2851_v49 }
 0x12a   : > { %vm1241_vm13 = vcmp.ge.f32.partialorder %v2682_v15, 0.0  ;;  %v3003_v11 = vadd.f32 %v1131_v60, %v1129_v18  ;;  %v1196_v4 = vmul.f32 %v1188_v39, %v2742_v31  ;;  %v1197_v5 = vmul.f32 %v1189_v38, %v2742_v31  ;;  %v3517_v38 = vld [vmem:[#allocation20_spill] sm:$0xff] }
 0x12b   : > { %v1316_v0 = vmul.f32 %v2685_v56, %v2445_v2  ;;  %v1256_v48 = vsel %vm1240_vm12, %v2673_v63, %v1248_v14  ;;  %v1266_v17 = vmul.f32 %v2594_v45, %v2851_v49  ;;  %vm1308_vm14 = vcmp.ge.f32.partialorder %v2685_v56, 0.0  ;;  %v3515_v45 = vld [vmem:[#allocation6_spill] sm:$0xff] }
 0x12c   : > { %v1317_v43 = vmul.f32 %v2720_v34, %v2445_v2  ;;  %v1257_v7 = vsel %vm1241_vm13, %v2682_v15, %v1249_v3  ;;  %vm1309_vm15 = vcmp.ge.f32.partialorder %v2720_v34, 0.0  ;;  %v1384_v33 = vmul.f32 %v2723_v21, %v2445_v2 }
 0x12d   : > { %v1385_v61 = vmul.f32 %v2726_v19, %v2445_v2  ;;  %v1204_v25 = vadd.f32 %v1198_v10, %v1196_v4  ;;  %v1267_v29 = vmul.f32 %v3515_v45, %v2851_v49  ;;  %vm1376_vm0 = vcmp.ge.f32.partialorder %v2723_v21, 0.0 }
 0x12e   : > { %v1671_v63 = vpop.eup %1670  ;;  %vm1377_vm1 = vcmp.ge.f32.partialorder %v2726_v19, 0.0  ;;  %v1213_v35 = vadd.f32 %v1199_v62, %v1197_v5  ;;  %v1264_v59 = vmul.f32 %v1256_v48, %v2742_v31  ;;  %v1324_v16 = vsel %vm1308_vm14, %v2685_v56, %v1316_v0  ;;  %v3518_v62 = vld [vmem:[#allocation22_spill] sm:$0xff] }
 0x12f   : > { %v1673_v15 = vpop.eup %1672  ;;  %v807_v26 = vmul.f32 %v1671_v63, %v2975_v32  ;;  %v1265_v9 = vmul.f32 %v1257_v7, %v2742_v31  ;;  %v1325_v58 = vsel %vm1309_vm15, %v2720_v34, %v1317_v43  ;;  %v1334_v60 = vmul.f32 %v3516_v37, %v2851_v49  ;;  %v3519_v34 = vld [vmem:[#allocation14_spill] sm:$0xff] }
 0x130   : > { %v817_v39 = vmul.f32 %v1673_v15, %v2977_v6  ;;  %v1335_v14 = vmul.f32 %v3517_v38, %v2851_v49  ;;  %v1392_v18 = vsel %vm1376_vm0, %v2723_v21, %v1384_v33  ;;  %v1393_v3 = vsel %vm1377_vm1, %v2726_v19, %v1385_v61 }
 0x131   : > { %v808_v56 = vmul.f32 %v1671_v63, %v807_v26  ;;  %v1332_v10 = vmul.f32 %v1324_v16, %v2742_v31  ;;  %v1402_v4 = vmul.f32 %v3518_v62, %v2851_v49  ;;  %v1403_v5 = vmul.f32 %v3519_v34, %v2851_v49 }
 0x132   : > { %v818_v0 = vmul.f32 %v1673_v15, %v817_v39  ;;  %v1272_v48 = vadd.f32 %v1266_v17, %v1264_v59  ;;  %v1281_v43 = vadd.f32 %v1267_v29, %v1265_v9  ;;  %v1333_v7 = vmul.f32 %v1325_v58, %v2742_v31 }
 0x133   : > { %v809_v45 = vmul.f32 0.5, %v808_v56  ;;  %v3045_v37 = vadd.f32 %v1334_v60, %v1332_v10  ;;  %v1400_v21 = vmul.f32 %v1392_v18, %v2742_v31  ;;  %v1401_v19 = vmul.f32 %v1393_v3, %v2742_v31  ;;  %v3520_v60 = vld [vmem:[#allocation29_spill] sm:$0xff]  ;;  %v3529_v3 = vld [vmem:[#allocation18_spill] sm:$0xff] }
 0x134   : > { %v819_v33 = vmul.f32 0.5, %v818_v0  ;;  %v3049_v61 = vadd.f32 %v1335_v14, %v1333_v7  ;;  %v3052_v16 = vstv %s3021_s8  ;;  %vm813_vm2 = vweird.f32 %v1671_v63  ;;  %v3530_v10 = vld [vmem:[#allocation26_spill] sm:$0xff] }
 0x135   : > { %v810_v26 = vsub.f32 1.5, %v809_v45  ;;  %v3054_v49 = vadd.f32 %v1402_v4, %v1400_v21  ;;  %v3056_v17 = vadd.f32 %v1403_v5, %v1401_v19  ;;  %vm823_vm3 = vweird.f32 %v1673_v15  ;;  %v3126_v45 = vpop.permute.xlu0 %920 }
 0x136   : > { %v820_v29 = vsub.f32 1.5, %v819_v33  ;;  %vm812_vm4 = vweird.f32 %v2975_v32  ;;  %vm822_vm5 = vweird.f32 %v2977_v6  ;;  %v932_v31 = vadd.f32 %v2943_v54, %v2807_v51 }
 0x137   : > { %v811_v59 = vmul.f32 %v1671_v63, %v810_v26  ;;  %vm814_vm6 = vmor %vm812_vm4, %vm813_vm2  ;;  %v941_v58 = vadd.f32 %v2946_v12, %v2810_v52  ;;  %v1001_v39 = vadd.f32 %v2949_v57, %v3520_v60  ;;  %v1010_v38 = vadd.f32 %v2952_v13, %v2838_v27  ;;  %v3521_v12 = vld [vmem:[#allocation63_spill] sm:$0xff] }
 0x138   : > { %v821_v9 = vmul.f32 %v1673_v15, %v820_v29  ;;  %vm824_vm7 = vmor %vm822_vm5, %vm823_vm3  ;;  %v3070_v32 = vadd.f32 %v2979_v50, %v2841_v20  ;;  %v3074_v51 = vadd.f32 %v2981_v41, %v2846_v23  ;;  %v3078_v54 = vadd.f32 %v2996_v55, %v2849_v44  ;;  %v3522_v50 = vld [vmem:[#allocation21_spill] sm:$0xff] }
 0x139   : > { %v815_v14 = vsel %vm814_vm6, %v1671_v63, %v811_v59  ;;  %v3085_v27 = vadd.f32 %v3003_v11, %v2854_v53  ;;  %v3088_v13 = vadd.f32 %v1204_v25, %v2857_v47  ;;  %v3094_v23 = vadd.f32 %v1213_v35, %v2860_v42  ;;  %v3523_v53 = vld [vmem:[#allocation12_spill] sm:$0xff]  ;;  %v3524_v47 = vld [vmem:[#allocation15_spill] sm:$0xff]  ;;  %v3525_v63 = vld [vmem:[#allocation25_spill] sm:$0xff] }
 0x13a   : > { %v825_v52 = vsel %vm824_vm7, %v1673_v15, %v821_v9  ;;  %v3081_v57 = vmul.f32 %v3521_v12, %v815_v14  ;;  %v3097_v44 = vadd.f32 %v1272_v48, %v2864_v1  ;;  %v3100_v6 = vadd.f32 %v1281_v43, %v2867_v40  ;;  %v3526_v42 = vld [vmem:[#allocation10_spill] sm:$0xff]  ;;  %v3527_v1 = vld [vmem:[#allocation13_spill] sm:$0xff]  ;;  %v3528_v40 = vld [vmem:[#allocation24_spill] sm:$0xff] }
 0x13b   : > { %v3091_v20 = vmul.f32 %v3521_v12, %v825_v52 }
 0x13c   : > { %v856_v41 = vmul.f32 %v3081_v57, %v3522_v50  ;;  %v958_v55 = vmul.f32 %v3081_v57, %v3523_v53  ;;  %v1026_v11 = vmul.f32 %v3081_v57, %v3524_v47  ;;  %v1094_v25 = vmul.f32 %v3081_v57, %v3525_v63 }
 0x13d   : > { %v857_v15 = vmul.f32 %v3091_v20, %v3526_v42  ;;  %v959_v35 = vmul.f32 %v3091_v20, %v3527_v1  ;;  %v1027_v18 = vmul.f32 %v3091_v20, %v3528_v40  ;;  %v1095_v56 = vmul.f32 %v3091_v20, %v3529_v3 }
 0x13e   : > { %v880_v62 = vadd.f32 %v3530_v10, %v856_v41  ;;  %v966_v4 = vadd.f32 %v958_v55, %v3530_v10  ;;  %v1034_v34 = vadd.f32 %v1026_v11, %v3530_v10  ;;  %v1102_v5 = vadd.f32 %v1094_v25, %v3530_v10 }
 0x13f   : > { %v881_v0 = vadd.f32 %v3530_v10, %v857_v15  ;;  %v967_v48 = vadd.f32 %v959_v35, %v3530_v10  ;;  %v1035_v43 = vadd.f32 %v1027_v18, %v3530_v10  ;;  %v1103_v7 = vadd.f32 %v1095_v56, %v3530_v10 }
 0x140   : > { %vm888_vm8 = vcmp.ge.f32.partialorder %v880_v62, 0.0  ;;  %v897_v21 = vmul.f32 %v2445_v2, %v880_v62  ;;  %vm974_vm9 = vcmp.ge.f32.partialorder %v966_v4, 0.0  ;;  %v982_v19 = vmul.f32 %v966_v4, %v2445_v2 }
 0x141   : > { %vm889_vm10 = vcmp.ge.f32.partialorder %v881_v0, 0.0  ;;  %v898_v33 = vmul.f32 %v2445_v2, %v881_v0  ;;  %vm975_vm11 = vcmp.ge.f32.partialorder %v967_v48, 0.0  ;;  %v983_v26 = vmul.f32 %v967_v48, %v2445_v2 }
 0x142   : > { %v905_v29 = vsel %vm888_vm8, %v880_v62, %v897_v21  ;;  %v990_v59 = vsel %vm974_vm9, %v966_v4, %v982_v19  ;;  %vm1042_vm12 = vcmp.ge.f32.partialorder %v1034_v34, 0.0  ;;  %vm1043_vm13 = vcmp.ge.f32.partialorder %v1035_v43, 0.0 }
 0x143   : > { %v906_v9 = vsel %vm889_vm10, %v881_v0, %v898_v33  ;;  %v929_v60 = vmul.f32 %v3126_v45, %v905_v29  ;;  %v991_v14 = vsel %vm975_vm11, %v967_v48, %v983_v26  ;;  %v998_v52 = vmul.f32 %v990_v59, %v3126_v45 }
 0x144   : > { %v930_v12 = vmul.f32 %v3126_v45, %v906_v9  ;;  %v999_v50 = vmul.f32 %v991_v14, %v3126_v45  ;;  %v1050_v41 = vmul.f32 %v1034_v34, %v2445_v2  ;;  %v1051_v53 = vmul.f32 %v1035_v43, %v2445_v2 }
 0x145   : > { %v933_v55 = vadd.f32 %v932_v31, %v929_v60  ;;  %v1002_v47 = vadd.f32 %v1001_v39, %v998_v52  ;;  %vm1110_vm14 = vcmp.ge.f32.partialorder %v1102_v5, 0.0  ;;  %vm1111_vm15 = vcmp.ge.f32.partialorder %v1103_v7, 0.0 }
 0x146   : > { %v942_v11 = vadd.f32 %v941_v58, %v930_v12  ;;  %v1011_v63 = vadd.f32 %v1010_v38, %v999_v50  ;;  %v1058_v25 = vsel %vm1042_vm12, %v1034_v34, %v1050_v41  ;;  %v1059_v42 = vsel %vm1043_vm13, %v1035_v43, %v1051_v53 }
 0x147   : > { %v934_v15 = vrot.slane %v933_v55, 4  ;;  %v1003_v1 = vrot.slane %v1002_v47, 4  ;;  %v1066_v35 = vmul.f32 %v1058_v25, %v3126_v45  ;;  %v1067_v40 = vmul.f32 %v1059_v42, %v3126_v45 }
 0x148   : > { %v943_v18 = vrot.slane %v942_v11, 4  ;;  %v1012_v3 = vrot.slane %v1011_v63, 4  ;;  %v1118_v56 = vmul.f32 %v1102_v5, %v2445_v2  ;;  %v1119_v31 = vmul.f32 %v1103_v7, %v2445_v2 }
 0x149   : > { %v935_v39 = vadd.f32 %v934_v15, %v933_v55  ;;  %v1004_v62 = vadd.f32 %v1003_v1, %v1002_v47  ;;  %v1070_v58 = vadd.f32 %v3070_v32, %v1066_v35  ;;  %v1079_v38 = vadd.f32 %v3074_v51, %v1067_v40 }
 0x14a   : > { %v944_v4 = vadd.f32 %v943_v18, %v942_v11  ;;  %v1013_v34 = vadd.f32 %v1012_v3, %v1011_v63  ;;  %v1126_v0 = vsel %vm1110_vm14, %v1102_v5, %v1118_v56  ;;  %v1127_v48 = vsel %vm1111_vm15, %v1103_v7, %v1119_v31 }
 0x14b   : > { %v936_v43 = vrot.slane %v935_v39, 2  ;;  %v1005_v21 = vrot.slane %v1004_v62, 2  ;;  %v1071_v19 = vrot.slane %v1070_v58, 4  ;;  %v1080_v33 = vrot.slane %v1079_v38, 4 }
 0x14c   : > { %v945_v26 = vrot.slane %v944_v4, 2  ;;  %v1014_v29 = vrot.slane %v1013_v34, 2  ;;  %v1134_v59 = vmul.f32 %v1126_v0, %v3126_v45  ;;  %v1135_v9 = vmul.f32 %v1127_v48, %v3126_v45  ;;  %v3531_v48 = vld [vmem:[#allocation23_spill] sm:$0xff] }
 0x14d   : > { %v937_v60 = vadd.f32 %v936_v43, %v935_v39  ;;  %v1006_v32 = vadd.f32 %v1005_v21, %v1004_v62  ;;  %v1072_v14 = vadd.f32 %v1071_v19, %v1070_v58  ;;  %v1081_v51 = vadd.f32 %v1080_v33, %v1079_v38  ;;  %v3532_v21 = vld [vmem:[#allocation28_spill] sm:$0xff] }
 0x14e   : > { %v946_v52 = vadd.f32 %v945_v26, %v944_v4  ;;  %v1015_v12 = vadd.f32 %v1014_v29, %v1013_v34  ;;  %v1138_v5 = vadd.f32 %v3078_v54, %v1134_v59  ;;  %v1147_v7 = vadd.f32 %v3085_v27, %v1135_v9  ;;  %v3533_v59 = vld [vmem:[#allocation31_spill] sm:$0xff] }
 0x14f   : > { %v938_v50 = vrot.slane %v937_v60, 1  ;;  %v1007_v41 = vrot.slane %v1006_v32, 1  ;;  %v1073_v53 = vrot.slane %v1072_v14, 2  ;;  %v1082_v55 = vrot.slane %v1081_v51, 2 }
 0x150   : > { %v947_v47 = vrot.slane %v946_v52, 1  ;;  %v1016_v11 = vrot.slane %v1015_v12, 1  ;;  %v1139_v63 = vrot.slane %v1138_v5, 4  ;;  %v1148_v25 = vrot.slane %v1147_v7, 4 }
 0x151   : > { %v939_v42 = vadd.f32 %v938_v50, %v937_v60  ;;  %v1008_v15 = vadd.f32 %v1007_v41, %v1006_v32  ;;  %v1074_v1 = vadd.f32 %v1073_v53, %v1072_v14  ;;  %v1083_v35 = vadd.f32 %v1082_v55, %v1081_v51 }
 0x152   : > { %v948_v40 = vadd.f32 %v947_v47, %v946_v52  ;;  %v1017_v18 = vadd.f32 %v1016_v11, %v1015_v12  ;;  %v1140_v3 = vadd.f32 %v1139_v63, %v1138_v5  ;;  %v1149_v56 = vadd.f32 %v1148_v25, %v1147_v7 }
 0x153   : > { %v3153_v54 = vadd.f32 %v3052_v16, %v939_v42  ;;  %v3156_v27 = vadd.f32 %v1008_v15, %v3052_v16  ;;  %v1075_v31 = vrot.slane %v1074_v1, 1  ;;  %v1084_v39 = vrot.slane %v1083_v35, 1 }
 0x154   : > { %v3159_v62 = vadd.f32 %v3052_v16, %v948_v40  ;;  %v3162_v58 = vadd.f32 %v1017_v18, %v3052_v16  ;;  %v1141_v38 = vrot.slane %v1140_v3, 2  ;;  %v1150_v4 = vrot.slane %v1149_v56, 2 }
 0x155   : > { %v1076_v34 = vadd.f32 %v1075_v31, %v1074_v1  ;;  %v1085_v0 = vadd.f32 %v1084_v39, %v1083_v35  ;;  %v1162_v43 = vmul.f32 %v3081_v57, %v3531_v48  ;;  %v1163_v19 = vmul.f32 %v3091_v20, %v3532_v21 }
 0x156   : > { %v1142_v33 = vadd.f32 %v1141_v38, %v1140_v3  ;;  %v1151_v26 = vadd.f32 %v1150_v4, %v1149_v56  ;;  %v1230_v29 = vmul.f32 %v3081_v57, %v2884_v46  ;;  %v1231_v9 = vmul.f32 %v3091_v20, %v3533_v59 }
 0x157   : > { %v3173_v60 = vadd.f32 %v1076_v34, %v3052_v16  ;;  %v3176_v32 = vadd.f32 %v1085_v0, %v3052_v16  ;;  %v1170_v14 = vadd.f32 %v1162_v43, %v3530_v10  ;;  %v1171_v51 = vadd.f32 %v1163_v19, %v3530_v10  ;;  %v3534_v0 = vld [vmem:[#allocation27_spill] sm:$0xff]  ;;  %v3535_v43 = vld [vmem:[#allocation30_spill] sm:$0xff] }
 0x158   : > { %v1143_v52 = vrot.slane %v1142_v33, 1  ;;  %v1152_v12 = vrot.slane %v1151_v26, 1  ;;  %v1238_v5 = vadd.f32 %v1230_v29, %v3530_v10  ;;  %v1239_v7 = vadd.f32 %v1231_v9, %v3530_v10 }
 0x159   : > { %vm1178_vm0 = vcmp.ge.f32.partialorder %v1170_v14, 0.0  ;;  %vm1179_vm1 = vcmp.ge.f32.partialorder %v1171_v51, 0.0  ;;  %v1186_v46 = vmul.f32 %v1170_v14, %v2445_v2  ;;  %v1187_v50 = vmul.f32 %v1171_v51, %v2445_v2 }
 0x15a   : > { %v1144_v41 = vadd.f32 %v1143_v52, %v1142_v33  ;;  %v1153_v53 = vadd.f32 %v1152_v12, %v1151_v26  ;;  %vm1246_vm2 = vcmp.ge.f32.partialorder %v1238_v5, 0.0  ;;  %vm1247_vm3 = vcmp.ge.f32.partialorder %v1239_v7, 0.0 }
 0x15b   : > { %v1194_v55 = vsel %vm1178_vm0, %v1170_v14, %v1186_v46  ;;  %v1195_v47 = vsel %vm1179_vm1, %v1171_v51, %v1187_v50  ;;  %v1254_v11 = vmul.f32 %v1238_v5, %v2445_v2  ;;  %v1255_v63 = vmul.f32 %v1239_v7, %v2445_v2 }
 0x15c   : > { %v3187_v25 = vadd.f32 %v1144_v41, %v3052_v16  ;;  %v3190_v42 = vadd.f32 %v1153_v53, %v3052_v16  ;;  %v1202_v15 = vmul.f32 %v1194_v55, %v3126_v45  ;;  %v1203_v1 = vmul.f32 %v1195_v47, %v3126_v45 }
 0x15d   : > { %v1262_v35 = vsel %vm1246_vm2, %v1238_v5, %v1254_v11  ;;  %v1263_v40 = vsel %vm1247_vm3, %v1239_v7, %v1255_v63  ;;  %v1298_v18 = vmul.f32 %v3081_v57, %v2894_v24  ;;  %v1299_v3 = vmul.f32 %v3091_v20, %v2898_v8 }
 0x15e   : > { %v1206_v56 = vadd.f32 %v3088_v13, %v1202_v15  ;;  %v1215_v31 = vadd.f32 %v3094_v23, %v1203_v1  ;;  %v1270_v39 = vmul.f32 %v1262_v35, %v3126_v45  ;;  %v1271_v38 = vmul.f32 %v1263_v40, %v3126_v45 }
 0x15f   : > { %v1306_v4 = vadd.f32 %v1298_v18, %v3530_v10  ;;  %v1307_v34 = vadd.f32 %v1299_v3, %v3530_v10  ;;  %v1341_v48 = vadd.f32 %v3045_v37, %v3534_v0  ;;  %v1350_v24 = vadd.f32 %v3049_v61, %v3535_v43  ;;  %v1428_v43 = vld [vmem:[%s3224_s12] sm:$0xff] }
 0x160   : > { %v1207_v21 = vrot.slane %v1206_v56, 4  ;;  %v1216_v8 = vrot.slane %v1215_v31, 4  ;;  %v1274_v13 = vadd.f32 %v3097_v44, %v1270_v39  ;;  %v1283_v23 = vadd.f32 %v3100_v6, %v1271_v38 }
 0x161   : > { %vm1314_vm4 = vcmp.ge.f32.partialorder %v1306_v4, 0.0  ;;  %vm1315_vm5 = vcmp.ge.f32.partialorder %v1307_v34, 0.0  ;;  %v1322_v19 = vmul.f32 %v1306_v4, %v2445_v2  ;;  %v1323_v33 = vmul.f32 %v1307_v34, %v2445_v2 }
 0x162   : > { %v1208_v26 = vadd.f32 %v1207_v21, %v1206_v56  ;;  %v1217_v29 = vadd.f32 %v1216_v8, %v1215_v31  ;;  %v1275_v59 = vrot.slane %v1274_v13, 4  ;;  %v1284_v37 = vrot.slane %v1283_v23, 4 }
 0x163   : > { %v1330_v9 = vsel %vm1314_vm4, %v1306_v4, %v1322_v19  ;;  %v1331_v14 = vsel %vm1315_vm5, %v1307_v34, %v1323_v33  ;;  %v1366_v61 = vmul.f32 %v3081_v57, %v2906_v28  ;;  %v1367_v44 = vmul.f32 %v3091_v20, %v2910_v36  ;;  %v1602_v19 = vld [vmem:[%s3224_s12 + $0x10] sm:$0xff]  ;;  %v1603_v33 = vld [vmem:[%s3224_s12 + $0x18] sm:$0xff] }
 0x164   : > { %v1209_v6 = vrot.slane %v1208_v26, 2  ;;  %v1218_v51 = vrot.slane %v1217_v29, 2  ;;  %v1276_v52 = vadd.f32 %v1275_v59, %v1274_v13  ;;  %v1285_v12 = vadd.f32 %v1284_v37, %v1283_v23 }
 0x165   : > { %v1338_v5 = vmul.f32 %v1330_v9, %v3126_v45  ;;  %v1339_v7 = vmul.f32 %v1331_v14, %v3126_v45  ;;  %v1374_v46 = vadd.f32 %v1366_v61, %v3530_v10  ;;  %v1375_v50 = vadd.f32 %v1367_v44, %v3530_v10  ;;  %v1604_v9 = vld [vmem:[%s3224_s12 + $0x20] sm:$0xff]  ;;  %v1605_v14 = vld [vmem:[%s3224_s12 + $0x28] sm:$0xff] }
 0x166   : > { %v1210_v41 = vadd.f32 %v1209_v6, %v1208_v26  ;;  %v1219_v53 = vadd.f32 %v1218_v51, %v1217_v29  ;;  %v1277_v55 = vrot.slane %v1276_v52, 2  ;;  %v1286_v28 = vrot.slane %v1285_v12, 2 }
 0x167   : > { %v1342_v57 = vadd.f32 %v1341_v48, %v1338_v5  ;;  %v1351_v47 = vadd.f32 %v1350_v24, %v1339_v7  ;;  %vm1382_vm6 = vcmp.ge.f32.partialorder %v1374_v46, 0.0  ;;  %vm1383_vm7 = vcmp.ge.f32.partialorder %v1375_v50, 0.0  ;;  %v1429_v24 = vld [vmem:[%s3224_s12 + $0x8] sm:$0xff] }
 0x168   : > { %v1211_v36 = vrot.slane %v1210_v41, 1  ;;  %v1220_v20 = vrot.slane %v1219_v53, 1  ;;  %v1278_v11 = vadd.f32 %v1277_v55, %v1276_v52  ;;  %v1287_v63 = vadd.f32 %v1286_v28, %v1285_v12  ;;  %v1609_v55 = vld [vmem:[%s3224_s12 + $0x48] sm:$0xff] }
 0x169   : > { %v1343_v15 = vrot.slane %v1342_v57, 4  ;;  %v1352_v10 = vrot.slane %v1351_v47, 4  ;;  %v1390_v1 = vmul.f32 %v1374_v46, %v2445_v2  ;;  %v1391_v35 = vmul.f32 %v1375_v50, %v2445_v2 }
 0x16a   : > { %v1212_v40 = vadd.f32 %v1211_v36, %v1210_v41  ;;  %v1221_v18 = vadd.f32 %v1220_v20, %v1219_v53  ;;  %v1279_v3 = vrot.slane %v1278_v11, 1  ;;  %v1288_v56 = vrot.slane %v1287_v63, 1  ;;  %v1608_v53 = vld [vmem:[%s3224_s12 + $0x40] sm:$0xff] }
 0x16b   : > { %v1344_v31 = vadd.f32 %v1343_v15, %v1342_v57  ;;  %v1353_v39 = vadd.f32 %v1352_v10, %v1351_v47  ;;  %v1398_v38 = vsel %vm1382_vm6, %v1374_v46, %v1390_v1  ;;  %v1399_v4 = vsel %vm1383_vm7, %v1375_v50, %v1391_v35 }
 0x16c   : > { %v1222_v34 = vadd.f32 %v1212_v40, %v3052_v16  ;;  %v1223_v0 = vadd.f32 %v1221_v18, %v3052_v16  ;;  %v1280_v48 = vadd.f32 %v1279_v3, %v1278_v11  ;;  %v1289_v2 = vadd.f32 %v1288_v56, %v1287_v63  ;;  %v1610_v11 = vld [vmem:[%s3224_s12 + $0x50] sm:$0xff]  ;;  %v1611_v63 = vld [vmem:[%s3224_s12 + $0x58] sm:$0xff] }
 0x16d   : > { %v1345_v21 = vrot.slane %v1344_v31, 2  ;;  %v1354_v8 = vrot.slane %v1353_v39, 2  ;;  %v1406_v13 = vmul.f32 %v1398_v38, %v3126_v45  ;;  %v1407_v23 = vmul.f32 %v1399_v4, %v3126_v45  ;;  %v1612_v4 = vld [vmem:[%s3224_s12 + $0x60] sm:$0xff] }
 0x16e   : > { %v1290_v26 = vadd.f32 %v1280_v48, %v3052_v16  ;;  %v1291_v29 = vadd.f32 %v1289_v2, %v3052_v16  ;;  %v1409_v59 = vadd.f32 %v3054_v49, %v2926_v30  ;;  %v1418_v37 = vadd.f32 %v3056_v17, %v2940_v22  ;;  %v1606_v30 = vld [vmem:[%s3224_s12 + $0x30] sm:$0xff]  ;;  %v1607_v49 = vld [vmem:[%s3224_s12 + $0x38] sm:$0xff] }
 0x16f   : > { %v1346_v61 = vadd.f32 %v1345_v21, %v1344_v31  ;;  %v1355_v44 = vadd.f32 %v1354_v8, %v1353_v39  ;;  %v1430_v45 = vmul.f32 %v1428_v43, %v3153_v54  ;;  %v1431_v6 = vmul.f32 %v1429_v24, %v3159_v62 }
 0x170   : > { %v1410_v51 = vadd.f32 %v1409_v59, %v1406_v13  ;;  %v1419_v52 = vadd.f32 %v1418_v37, %v1407_v23  ;;  %v1435_v12 = vmul.f32 %v1602_v19, %v3156_v27  ;;  %v1436_v5 = vmul.f32 %v1603_v33, %v3162_v58  ;;  %v1614_v23 = vld [vmem:[%s3224_s12 + $0x70] sm:$0xff]  ;;  %v1615_v19 = vld [vmem:[%s3224_s12 + $0x78] sm:$0xff] }
 0x171   : > { %v1347_v7 = vrot.slane %v1346_v61, 1  ;;  %v1356_v22 = vrot.slane %v1355_v44, 1  ;;  %v1442_v17 = vmul.f32 %v1604_v9, %v3173_v60  ;;  %v1443_v46 = vmul.f32 %v1605_v14, %v3176_v32 }
 0x172   : > { %v1411_v54 = vrot.slane %v1410_v51, 4  ;;  %v1420_v50 = vrot.slane %v1419_v52, 4  ;;  %v1437_v62 = vadd.f32 %v1435_v12, %v1430_v45  ;;  %v1438_v41 = vadd.f32 %v1436_v5, %v1431_v6 }
 0x173   : > { %v1348_v28 = vadd.f32 %v1347_v7, %v1346_v61  ;;  %v1357_v27 = vadd.f32 %v1356_v22, %v1355_v44  ;;  %v1449_v58 = vmul.f32 %v1606_v30, %v3187_v25  ;;  %v1450_v57 = vmul.f32 %v1607_v49, %v3190_v42 }
 0x174   : > { %v1412_v47 = vadd.f32 %v1411_v54, %v1410_v51  ;;  %v1421_v36 = vadd.f32 %v1420_v50, %v1419_v52  ;;  %v1444_v20 = vadd.f32 %v1442_v17, %v1437_v62  ;;  %v1445_v60 = vadd.f32 %v1443_v46, %v1438_v41 }
 0x175   : > { %v1456_v32 = vmul.f32 %v1608_v53, %v1222_v34  ;;  %v1457_v15 = vmul.f32 %v1609_v55, %v1223_v0  ;;  %v1358_v18 = vadd.f32 %v1348_v28, %v3052_v16  ;;  %v1359_v25 = vadd.f32 %v1357_v27, %v3052_v16  ;;  %v1613_v34 = vld [vmem:[%s3224_s12 + $0x68] sm:$0xff] }
 0x176   : > { %v1413_v10 = vrot.slane %v1412_v47, 2  ;;  %v1422_v1 = vrot.slane %v1421_v36, 2  ;;  %v1451_v35 = vadd.f32 %v1449_v58, %v1444_v20  ;;  %v1452_v40 = vadd.f32 %v1450_v57, %v1445_v60 }
 0x177   : > { %v1463_v3 = vmul.f32 %v1610_v11, %v1290_v26  ;;  %v1464_v42 = vmul.f32 %v1611_v63, %v1291_v29  ;;  %v1470_v8 = vmul.f32 %v1612_v4, %v1358_v18  ;;  %v1471_v13 = vmul.f32 %v1613_v34, %v1359_v25 }
 0x178   : > { %v1414_v56 = vadd.f32 %v1413_v10, %v1412_v47  ;;  %v1423_v31 = vadd.f32 %v1422_v1, %v1421_v36  ;;  %v1458_v39 = vadd.f32 %v1456_v32, %v1451_v35  ;;  %v1459_v38 = vadd.f32 %v1457_v15, %v1452_v40 }
 0x179   : > { %v1481_v14 = vstv %s1586_s13 }
 0x17a   : > { %v1415_v0 = vrot.slane %v1414_v56, 1  ;;  %v1424_v48 = vrot.slane %v1423_v31, 1  ;;  %v1465_v2 = vadd.f32 %v1463_v3, %v1458_v39  ;;  %v1466_v43 = vadd.f32 %v1464_v42, %v1459_v38 }
 0x17c   : > { %v1416_v24 = vadd.f32 %v1415_v0, %v1414_v56  ;;  %v1425_v21 = vadd.f32 %v1424_v48, %v1423_v31  ;;  %v1472_v29 = vadd.f32 %v1470_v8, %v1465_v2  ;;  %v1473_v59 = vadd.f32 %v1471_v13, %v1466_v43 }
 0x17e   : > { %v1426_v33 = vadd.f32 %v1416_v24, %v3052_v16  ;;  %v1427_v26 = vadd.f32 %v1425_v21, %v3052_v16 }
 0x180   : > { %v1477_v37 = vmul.f32 %v1614_v23, %v1426_v33  ;;  %v1478_v9 = vmul.f32 %v1615_v19, %v1427_v26 }
 0x182   : > { %v1479_v61 = vadd.f32 %v1477_v37, %v1472_v29  ;;  %v1480_v44 = vadd.f32 %v1478_v9, %v1473_v59 }
 0x184   : > { %v1482_v45 = vadd.f32 %v1481_v14, %v1479_v61  ;;  %v1483_v6 = vadd.f32 %v1481_v14, %v1480_v44 }
 0x186   : > { %1484 = vst [vmem:[%s231_s19] sm:$0xff] %v1482_v45 }
 0x187   : > { %1485 = vst [vmem:[%s231_s19 + $0x8] sm:$0xff] %v1483_v6 }
 0x188 PF: > { %s15_s15 = sadd.s32 1, %s1699_s15  }
 0x189   : > { %p12_p7 = scmp.ge.s32.totalorder %s15_s15, 4  }
 0x18b   :  { %14 = sbr.rel (!%p12_p7) target bundleno = 1 (0x1), region = 96 }
 0x190   :  { %1507 = vsyncpa [#allocation3], 1 }
 0x191   :  { %1509 = vsyncpa [#allocation3 + $0x1], 1 }

</bundles_post_ra>
